<compile_context>
chip_gen: v7x
topology: tpu7x:2x2x1
jax: 0.10.0
libtpu: 0.0.40
codegen_flags: <defaults>
</compile_context>

<pallas_src>
import math
import functools

import jax
import jax.numpy as jnp
from jax.experimental import pallas as pl
from jax.experimental.pallas import tpu as pltpu


def _round_up(a, b):
    return ((a + b - 1) // b) * b


# ---------------------------------------------------------------------------
# Fused SARGCN.forward_isolated kernel (both layers + final max).
# ---------------------------------------------------------------------------
def _make_fused_kernel(H: int, DK: int, T: int):
    D = H * DK

    def kernel(x_ref, prev1_ref, prev2_ref, mask_ref,
               wl1_ref, bte1_ref, wq1_ref, wkv1_ref,
               wl2_ref, b2_ref, te2_ref, wq2_ref, wkv2_ref,
               pool_ref, tile_ref, out_ref):
        mask = mask_ref[...]          # [tn, T]
        pool = pool_ref[...]          # [D, H]  (head pooling, 1/sqrt(DK) folded in)
        tile_m = tile_ref[...]        # [H, D]  (head -> dk-major broadcast)

        def attn_layer(cur, prev_ref, wq, wkv):
            tn = cur.shape[0]
            # all-time stack, time-major rows: [prev_0; ...; prev_{T-2}; cur]
            xs = [prev_ref[:, t, :] for t in range(T - 1)] + [cur]
            x_all = jnp.concatenate(xs, axis=0)                              # [T*tn, D]
            kv = jnp.dot(x_all, wkv, preferred_element_type=jnp.float32)     # [T*tn, 2D]
            q = jnp.dot(cur, wq, preferred_element_type=jnp.float32)         # [tn, D]

            # per-time scores, vectorized over heads: [tn, H] each
            s_list = []
            for t in range(T):
                k_t = kv[t * tn:(t + 1) * tn, :D]
                s = jnp.dot(q * k_t, pool, preferred_element_type=jnp.float32)
                s_list.append(s + mask[:, t:t + 1])   # decay_weight == 0 branch

            # softmax over time (element-wise across the T [tn, H] slabs)
            m = s_list[0]
            for t in range(1, T):
                m = jnp.maximum(m, s_list[t])
            e_list = [jnp.exp(s - m) for s in s_list]
            denom = e_list[0]
            for t in range(1, T):
                denom = denom + e_list[t]
            inv = pl.reciprocal(denom, approx=True)

            # weighted sum of (column-permuted) v -> output already d_k-major
            acc = jnp.zeros((tn, D), jnp.float32)
            for t in range(T):
                v_t = kv[t * tn:(t + 1) * tn, D:]
                p_full = jnp.dot(e_list[t] * inv, tile_m,
                                 preferred_element_type=jnp.float32)          # [tn, D]
                acc = acc + p_full * v_t
            return acc

        x = x_ref[...]
        # layer 1: self-loop linear (activation None) + time embedding (pre-fused bias)
        cur1 = jnp.dot(x, wl1_ref[...], preferred_element_type=jnp.float32) + bte1_ref[...]
        attn1 = attn_layer(cur1, prev1_ref, wq1_ref[...], wkv1_ref[...])

        # layer 2: self-loop linear + bias, relu, then time embedding
        cur2 = jnp.dot(attn1, wl2_ref[...], preferred_element_type=jnp.float32) + b2_ref[...]
        cur2 = jnp.maximum(cur2, 0.0) + te2_ref[...]
        attn2 = attn_layer(cur2, prev2_ref, wq2_ref[...], wkv2_ref[...])

        # torch.max(torch.stack([first, second], dim=-1), dim=-1)[0]
        out_ref[...] = jnp.maximum(attn1, attn2)

    return kernel


# ---------------------------------------------------------------------------
# Wrapper: weight fusion / permutation, row padding, pallas_call.
# ---------------------------------------------------------------------------
def sargcn_forward_isolated(params, x, prev1, prev2, local_attn_mask, time_idx,
                            *, heads=8, block_rows=512):
    N, D = x.shape
    t_prev = prev1.shape[1]
    T = t_prev + 1
    assert D % heads == 0
    DK = D // heads
    scale = 1.0 / math.sqrt(DK)

    # Column-permute Wv so the attention output comes out d_k-major
    # (matches torch's .transpose(1,2).contiguous().view(bs, in_feat)).
    def perm_dk_major(w):
        return w.reshape(D, heads, DK).transpose(0, 2, 1).reshape(D, D)

    wkv1 = jnp.concatenate([params["wk_1"], perm_dk_major(params["wv_1"])], axis=1)
    wkv2 = jnp.concatenate([params["wk_2"], perm_dk_major(params["wv_2"])], axis=1)

    te1 = params["time_embed_1"][time_idx][None, :]
    te2 = params["time_embed_2"][time_idx][None, :]
    bte1 = params["b_1"] + te1            # layer 1 has no activation -> safe to fuse
    b2 = params["b_2"]                    # layer 2 relu sits between bias and te

    # Constant head-pooling / head-broadcast matrices.
    pool = jnp.repeat(jnp.eye(heads, dtype=jnp.float32), DK, axis=0) * scale   # [D, H]
    tile_m = jnp.tile(jnp.eye(heads, dtype=jnp.float32), (1, DK))              # [H, D]

    # Row tiling: pad N up to a multiple of the row tile (no tn=N fallback).
    tn = min(block_rows, _round_up(N, 8))
    Np = _round_up(N, tn)
    pad = Np - N
    if pad:
        x = jnp.pad(x, ((0, pad), (0, 0)))
        prev1 = jnp.pad(prev1, ((0, pad), (0, 0), (0, 0)))
        prev2 = jnp.pad(prev2, ((0, pad), (0, 0), (0, 0)))
        local_attn_mask = jnp.pad(local_attn_mask, ((0, pad), (0, 0)))

    out = pl.pallas_call(
        _make_fused_kernel(heads, DK, T),
        out_shape=jax.ShapeDtypeStruct((Np, D), jnp.float32),
        grid=(Np // tn,),
        in_specs=[
            pl.BlockSpec((tn, D), lambda i: (i, 0)),            # x
            pl.BlockSpec((tn, t_prev, D), lambda i: (i, 0, 0)),  # prev1
            pl.BlockSpec((tn, t_prev, D), lambda i: (i, 0, 0)),  # prev2
            pl.BlockSpec((tn, T), lambda i: (i, 0)),            # mask
            pl.BlockSpec((D, D), lambda i: (0, 0)),             # w_loop_1
            pl.BlockSpec((1, D), lambda i: (0, 0)),             # b1 + te1
            pl.BlockSpec((D, D), lambda i: (0, 0)),             # wq_1
            pl.BlockSpec((D, 2 * D), lambda i: (0, 0)),         # [wk_1 | wv_1']
            pl.BlockSpec((D, D), lambda i: (0, 0)),             # w_loop_2
            pl.BlockSpec((1, D), lambda i: (0, 0)),             # b2
            pl.BlockSpec((1, D), lambda i: (0, 0)),             # te2
            pl.BlockSpec((D, D), lambda i: (0, 0)),             # wq_2
            pl.BlockSpec((D, 2 * D), lambda i: (0, 0)),         # [wk_2 | wv_2']
            pl.BlockSpec((D, heads), lambda i: (0, 0)),         # pool
            pl.BlockSpec((heads, D), lambda i: (0, 0)),         # tile
        ],
        out_specs=pl.BlockSpec((tn, D), lambda i: (i, 0)),
        compiler_params=pltpu.CompilerParams(dimension_semantics=("parallel",)),
    )(x, prev1, prev2, local_attn_mask,
      params["w_loop_1"], bte1, params["wq_1"], wkv1,
      params["w_loop_2"], b2, te2, params["wq_2"], wkv2,
      pool, tile_m)

    return out[:N]


# ---------------------------------------------------------------------------
# Pure-JAX reference (follows the PyTorch code literally) for validation.
# ---------------------------------------------------------------------------
def sargcn_reference(params, x, prev1, prev2, mask, time_idx, heads=8):
    N, D = x.shape
    DK = D // heads

    def calc_result(cur, prev, wq, wk, wv):
        all_t = jnp.concatenate([prev, cur[:, None, :]], axis=1)               # [N, T, D]
        q = (cur @ wq).reshape(N, 1, heads, DK).transpose(0, 2, 1, 3)          # [N,H,1,DK]
        k = (all_t @ wk).reshape(N, -1, heads, DK).transpose(0, 2, 1, 3)       # [N,H,T,DK]
        v = (all_t @ wv).reshape(N, -1, heads, DK).transpose(0, 2, 1, 3)       # [N,H,T,DK]
        scores = jnp.einsum('nhqd,nhtd->nhqt', q, k)[:, :, 0, :] / math.sqrt(DK)
        p = jax.nn.softmax(scores + mask[:, None, :], axis=-1)                 # [N,H,T]
        out = jnp.einsum('nht,nhtd->nhd', p, v)                                # [N,H,DK]
        return out.transpose(0, 2, 1).reshape(N, D)                            # d_k-major

    te1 = params["time_embed_1"][time_idx][None, :]
    cur1 = x @ params["w_loop_1"] + params["b_1"] + te1
    attn1 = calc_result(cur1, prev1, params["wq_1"], params["wk_1"], params["wv_1"])

    te2 = params["time_embed_2"][time_idx][None, :]
    cur2 = jnp.maximum(attn1 @ params["w_loop_2"] + params["b_2"], 0.0) + te2
    attn2 = calc_result(cur2, prev2, params["wq_2"], params["wk_2"], params["wv_2"])
    return jnp.maximum(attn1, attn2)


# ---------------------------------------------------------------------------
# Deterministic parameter init (weights stored [in, out] so y = x @ W).
# ---------------------------------------------------------------------------
def init_params(key, d, total_time):
    keys = jax.random.split(key, 12)
    s = 1.0 / math.sqrt(d)
    return {
        "w_loop_1": jax.random.uniform(keys[0], (d, d), jnp.float32, -s, s),
        "b_1": jax.random.uniform(keys[1], (1, d), jnp.float32, -s, s),
        "time_embed_1": jax.random.normal(keys[2], (total_time, d), jnp.float32) * 0.02,
        "wq_1": jax.random.uniform(keys[3], (d, d), jnp.float32, -s, s),
        "wk_1": jax.random.uniform(keys[4], (d, d), jnp.float32, -s, s),
        "wv_1": jax.random.uniform(keys[5], (d, d), jnp.float32, -s, s),
        "w_loop_2": jax.random.uniform(keys[6], (d, d), jnp.float32, -s, s),
        "b_2": jax.random.uniform(keys[7], (1, d), jnp.float32, -s, s),
        "time_embed_2": jax.random.normal(keys[8], (total_time, d), jnp.float32) * 0.02,
        "wq_2": jax.random.uniform(keys[9], (d, d), jnp.float32, -s, s),
        "wk_2": jax.random.uniform(keys[10], (d, d), jnp.float32, -s, s),
        "wv_2": jax.random.uniform(keys[11], (d, d), jnp.float32, -s, s),
    }


if __name__ == "__main__":
    N = 16          # number of nodes
    D = 64          # embed_size == hidden_size
    T_PREV = 3      # previous time steps (T = 4 total)
    TOTAL_TIME = 10

    key = jax.random.PRNGKey(0)
    k_par, k_x, k_p1, k_p2, k_m = jax.random.split(key, 5)

    params = init_params(k_par, D, TOTAL_TIME)
    x = jax.random.normal(k_x, (N, D), jnp.float32)
    prev1 = jax.random.normal(k_p1, (N, T_PREV, D), jnp.float32)
    prev2 = jax.random.normal(k_p2, (N, T_PREV, D), jnp.float32)
    local_attn_mask = jnp.where(
        jax.random.uniform(k_m, (N, T_PREV + 1)) > 0.2, 0.0, -1e9
    ).astype(jnp.float32)
    time_idx = 3

    fwd = jax.jit(functools.partial(sargcn_forward_isolated, params))
    out = fwd(x, prev1, prev2, local_attn_mask, time_idx)
    jax.block_until_ready(out)

    assert out.shape == (N, D) and out.dtype == jnp.float32
    assert bool(jnp.all(jnp.isfinite(out)))

    ref = sargcn_reference(params, x, prev1, prev2, local_attn_mask, time_idx)
    max_err = float(jnp.max(jnp.abs(out - ref)))
    assert max_err < 1e-2, f"mismatch vs reference: max abs err {max_err}"

    print("KERNEL_OK")
</pallas_src>

<mosaic_0001>
module attributes {stable_mosaic.version = 11 : i64} {
  func.func @kernel(%arg0: i32, %arg1: memref<16x64xf32, #tpu.memory_space<vmem>>, %arg2: memref<16x3x64xf32, #tpu.memory_space<vmem>>, %arg3: memref<16x3x64xf32, #tpu.memory_space<vmem>>, %arg4: memref<16x4xf32, #tpu.memory_space<vmem>>, %arg5: memref<64x64xf32, #tpu.memory_space<vmem>>, %arg6: memref<1x64xf32, #tpu.memory_space<vmem>>, %arg7: memref<64x64xf32, #tpu.memory_space<vmem>>, %arg8: memref<64x128xf32, #tpu.memory_space<vmem>>, %arg9: memref<64x64xf32, #tpu.memory_space<vmem>>, %arg10: memref<1x64xf32, #tpu.memory_space<vmem>>, %arg11: memref<1x64xf32, #tpu.memory_space<vmem>>, %arg12: memref<64x64xf32, #tpu.memory_space<vmem>>, %arg13: memref<64x128xf32, #tpu.memory_space<vmem>>, %arg14: memref<64x8xf32, #tpu.memory_space<vmem>>, %arg15: memref<8x64xf32, #tpu.memory_space<vmem>>, %arg16: memref<16x64xf32, #tpu.memory_space<vmem>>) attributes {dimension_semantics = [#tpu.dimension_semantics<parallel>], iteration_bounds = array<i64: 1>, scalar_prefetch = 0 : i64, scratch_operands = 0 : i64, tpu.core_type = #tpu.core_type<tc>, window_params = [{transform_indices = @transform_0, window_bounds = array<i64: 16, 64>}, {transform_indices = @transform_1, window_bounds = array<i64: 16, 3, 64>}, {transform_indices = @transform_2, window_bounds = array<i64: 16, 3, 64>}, {transform_indices = @transform_3, window_bounds = array<i64: 16, 4>}, {pipeline_mode = #tpu.pipeline_mode<synchronous>, transform_indices = @transform_4, window_bounds = array<i64: 64, 64>}, {pipeline_mode = #tpu.pipeline_mode<synchronous>, transform_indices = @transform_5, window_bounds = array<i64: 1, 64>}, {pipeline_mode = #tpu.pipeline_mode<synchronous>, transform_indices = @transform_6, window_bounds = array<i64: 64, 64>}, {pipeline_mode = #tpu.pipeline_mode<synchronous>, transform_indices = @transform_7, window_bounds = array<i64: 64, 128>}, {pipeline_mode = #tpu.pipeline_mode<synchronous>, transform_indices = @transform_8, window_bounds = array<i64: 64, 64>}, {pipeline_mode = #tpu.pipeline_mode<synchronous>, transform_indices = @transform_9, window_bounds = array<i64: 1, 64>}, {pipeline_mode = #tpu.pipeline_mode<synchronous>, transform_indices = @transform_10, window_bounds = array<i64: 1, 64>}, {pipeline_mode = #tpu.pipeline_mode<synchronous>, transform_indices = @transform_11, window_bounds = array<i64: 64, 64>}, {pipeline_mode = #tpu.pipeline_mode<synchronous>, transform_indices = @transform_12, window_bounds = array<i64: 64, 128>}, {pipeline_mode = #tpu.pipeline_mode<synchronous>, transform_indices = @transform_13, window_bounds = array<i64: 64, 8>}, {pipeline_mode = #tpu.pipeline_mode<synchronous>, transform_indices = @transform_14, window_bounds = array<i64: 8, 64>}, {transform_indices = @transform_15, window_bounds = array<i64: 16, 64>}]} {
    %c0 = arith.constant 0 : index
    %c0_0 = arith.constant 0 : index
    %0 = vector.load %arg4[%c0, %c0_0] : memref<16x4xf32, #tpu.memory_space<vmem>>, vector<16x4xf32>
    %c0_1 = arith.constant 0 : index
    %c0_2 = arith.constant 0 : index
    %1 = vector.load %arg14[%c0_1, %c0_2] : memref<64x8xf32, #tpu.memory_space<vmem>>, vector<64x8xf32>
    %c0_3 = arith.constant 0 : index
    %c0_4 = arith.constant 0 : index
    %2 = vector.load %arg15[%c0_3, %c0_4] : memref<8x64xf32, #tpu.memory_space<vmem>>, vector<8x64xf32>
    %c0_5 = arith.constant 0 : index
    %c0_6 = arith.constant 0 : index
    %3 = vector.load %arg1[%c0_5, %c0_6] : memref<16x64xf32, #tpu.memory_space<vmem>>, vector<16x64xf32>
    %c0_7 = arith.constant 0 : index
    %c0_8 = arith.constant 0 : index
    %4 = vector.load %arg5[%c0_7, %c0_8] : memref<64x64xf32, #tpu.memory_space<vmem>>, vector<64x64xf32>
    %cst = arith.constant dense<0.000000e+00> : vector<16x64xf32>
    %5 = tpu.matmul %3, %4, %cst {dimension_numbers = #tpu.dot_dimension_numbers<[1], [0], [0], [1], [0, 0, 1, 1], [], []>} : vector<16x64xf32>, vector<64x64xf32>, vector<16x64xf32> -> vector<16x64xf32>
    %c0_9 = arith.constant 0 : index
    %c0_10 = arith.constant 0 : index
    %6 = vector.load %arg6[%c0_9, %c0_10] : memref<1x64xf32, #tpu.memory_space<vmem>>, vector<1x64xf32>
    %7 = vector.broadcast %6 : vector<1x64xf32> to vector<16x64xf32>
    %8 = arith.addf %5, %7 : vector<16x64xf32>
    %c0_11 = arith.constant 0 : index
    %c0_12 = arith.constant 0 : index
    %9 = vector.load %arg7[%c0_11, %c0_12] : memref<64x64xf32, #tpu.memory_space<vmem>>, vector<64x64xf32>
    %c0_13 = arith.constant 0 : index
    %c0_14 = arith.constant 0 : index
    %10 = vector.load %arg8[%c0_13, %c0_14] : memref<64x128xf32, #tpu.memory_space<vmem>>, vector<64x128xf32>
    %c0_15 = arith.constant 0 : index
    %c0_16 = arith.constant 0 : index
    %c0_17 = arith.constant 0 : index
    %11 = vector.load %arg2[%c0_15, %c0_16, %c0_17] : memref<16x3x64xf32, #tpu.memory_space<vmem>>, vector<16x1x64xf32>
    %12 = vector.shape_cast %11 : vector<16x1x64xf32> to vector<16x64xf32>
    %c0_18 = arith.constant 0 : index
    %c1 = arith.constant 1 : index
    %c0_19 = arith.constant 0 : index
    %13 = vector.load %arg2[%c0_18, %c1, %c0_19] : memref<16x3x64xf32, #tpu.memory_space<vmem>>, vector<16x1x64xf32>
    %14 = vector.shape_cast %13 : vector<16x1x64xf32> to vector<16x64xf32>
    %c0_20 = arith.constant 0 : index
    %c2 = arith.constant 2 : index
    %c0_21 = arith.constant 0 : index
    %15 = vector.load %arg2[%c0_20, %c2, %c0_21] : memref<16x3x64xf32, #tpu.memory_space<vmem>>, vector<16x1x64xf32>
    %16 = vector.shape_cast %15 : vector<16x1x64xf32> to vector<16x64xf32>
    %17 = tpu.concatenate %12, %14, %16, %8 in 0 : vector<16x64xf32>, vector<16x64xf32>, vector<16x64xf32>, vector<16x64xf32> -> vector<64x64xf32>
    %cst_22 = arith.constant dense<0.000000e+00> : vector<64x128xf32>
    %18 = tpu.matmul %17, %10, %cst_22 {dimension_numbers = #tpu.dot_dimension_numbers<[1], [0], [0], [1], [0, 0, 1, 1], [], []>} : vector<64x64xf32>, vector<64x128xf32>, vector<64x128xf32> -> vector<64x128xf32>
    %cst_23 = arith.constant dense<0.000000e+00> : vector<16x64xf32>
    %19 = tpu.matmul %8, %9, %cst_23 {dimension_numbers = #tpu.dot_dimension_numbers<[1], [0], [0], [1], [0, 0, 1, 1], [], []>} : vector<16x64xf32>, vector<64x64xf32>, vector<16x64xf32> -> vector<16x64xf32>
    %20 = vector.extract_strided_slice %18 {offsets = [0, 0], sizes = [16, 64], strides = [1, 1]} : vector<64x128xf32> to vector<16x64xf32>
    %21 = arith.mulf %19, %20 : vector<16x64xf32>
    %cst_24 = arith.constant dense<0.000000e+00> : vector<16x8xf32>
    %22 = tpu.matmul %21, %1, %cst_24 {dimension_numbers = #tpu.dot_dimension_numbers<[1], [0], [0], [1], [0, 0, 1, 1], [], []>} : vector<16x64xf32>, vector<64x8xf32>, vector<16x8xf32> -> vector<16x8xf32>
    %23 = vector.extract_strided_slice %0 {offsets = [0, 0], sizes = [16, 1], strides = [1, 1]} : vector<16x4xf32> to vector<16x1xf32>
    %24 = vector.broadcast %23 : vector<16x1xf32> to vector<16x8xf32>
    %25 = arith.addf %22, %24 : vector<16x8xf32>
    %26 = vector.extract_strided_slice %18 {offsets = [16, 0], sizes = [16, 64], strides = [1, 1]} : vector<64x128xf32> to vector<16x64xf32>
    %27 = arith.mulf %19, %26 : vector<16x64xf32>
    %cst_25 = arith.constant dense<0.000000e+00> : vector<16x8xf32>
    %28 = tpu.matmul %27, %1, %cst_25 {dimension_numbers = #tpu.dot_dimension_numbers<[1], [0], [0], [1], [0, 0, 1, 1], [], []>} : vector<16x64xf32>, vector<64x8xf32>, vector<16x8xf32> -> vector<16x8xf32>
    %29 = vector.extract_strided_slice %0 {offsets = [0, 1], sizes = [16, 1], strides = [1, 1]} : vector<16x4xf32> to vector<16x1xf32>
    %30 = vector.broadcast %29 : vector<16x1xf32> to vector<16x8xf32>
    %31 = arith.addf %28, %30 : vector<16x8xf32>
    %32 = vector.extract_strided_slice %18 {offsets = [32, 0], sizes = [16, 64], strides = [1, 1]} : vector<64x128xf32> to vector<16x64xf32>
    %33 = arith.mulf %19, %32 : vector<16x64xf32>
    %cst_26 = arith.constant dense<0.000000e+00> : vector<16x8xf32>
    %34 = tpu.matmul %33, %1, %cst_26 {dimension_numbers = #tpu.dot_dimension_numbers<[1], [0], [0], [1], [0, 0, 1, 1], [], []>} : vector<16x64xf32>, vector<64x8xf32>, vector<16x8xf32> -> vector<16x8xf32>
    %35 = vector.extract_strided_slice %0 {offsets = [0, 2], sizes = [16, 1], strides = [1, 1]} : vector<16x4xf32> to vector<16x1xf32>
    %36 = vector.broadcast %35 : vector<16x1xf32> to vector<16x8xf32>
    %37 = arith.addf %34, %36 : vector<16x8xf32>
    %38 = vector.extract_strided_slice %18 {offsets = [48, 0], sizes = [16, 64], strides = [1, 1]} : vector<64x128xf32> to vector<16x64xf32>
    %39 = arith.mulf %19, %38 : vector<16x64xf32>
    %cst_27 = arith.constant dense<0.000000e+00> : vector<16x8xf32>
    %40 = tpu.matmul %39, %1, %cst_27 {dimension_numbers = #tpu.dot_dimension_numbers<[1], [0], [0], [1], [0, 0, 1, 1], [], []>} : vector<16x64xf32>, vector<64x8xf32>, vector<16x8xf32> -> vector<16x8xf32>
    %41 = vector.extract_strided_slice %0 {offsets = [0, 3], sizes = [16, 1], strides = [1, 1]} : vector<16x4xf32> to vector<16x1xf32>
    %42 = vector.broadcast %41 : vector<16x1xf32> to vector<16x8xf32>
    %43 = arith.addf %40, %42 : vector<16x8xf32>
    %44 = arith.maximumf %25, %31 : vector<16x8xf32>
    %45 = arith.maximumf %44, %37 : vector<16x8xf32>
    %46 = arith.maximumf %45, %43 : vector<16x8xf32>
    %47 = arith.subf %25, %46 : vector<16x8xf32>
    %48 = math.exp %47 : vector<16x8xf32>
    %49 = arith.subf %31, %46 : vector<16x8xf32>
    %50 = math.exp %49 : vector<16x8xf32>
    %51 = arith.subf %37, %46 : vector<16x8xf32>
    %52 = math.exp %51 : vector<16x8xf32>
    %53 = arith.subf %43, %46 : vector<16x8xf32>
    %54 = math.exp %53 : vector<16x8xf32>
    %55 = arith.addf %48, %50 : vector<16x8xf32>
    %56 = arith.addf %55, %52 : vector<16x8xf32>
    %57 = arith.addf %56, %54 : vector<16x8xf32>
    %58 = tpu.reciprocal %57 {approx = true} : vector<16x8xf32> -> vector<16x8xf32>
    %cst_28 = arith.constant 0.000000e+00 : f32
    %59 = vector.broadcast %cst_28 : f32 to vector<16x64xf32>
    %60 = vector.extract_strided_slice %18 {offsets = [0, 64], sizes = [16, 64], strides = [1, 1]} : vector<64x128xf32> to vector<16x64xf32>
    %61 = arith.mulf %48, %58 : vector<16x8xf32>
    %cst_29 = arith.constant dense<0.000000e+00> : vector<16x64xf32>
    %62 = tpu.matmul %61, %2, %cst_29 {dimension_numbers = #tpu.dot_dimension_numbers<[1], [0], [0], [1], [0, 0, 1, 1], [], []>} : vector<16x8xf32>, vector<8x64xf32>, vector<16x64xf32> -> vector<16x64xf32>
    %63 = arith.mulf %62, %60 : vector<16x64xf32>
    %64 = arith.addf %59, %63 : vector<16x64xf32>
    %65 = vector.extract_strided_slice %18 {offsets = [16, 64], sizes = [16, 64], strides = [1, 1]} : vector<64x128xf32> to vector<16x64xf32>
    %66 = arith.mulf %50, %58 : vector<16x8xf32>
    %cst_30 = arith.constant dense<0.000000e+00> : vector<16x64xf32>
    %67 = tpu.matmul %66, %2, %cst_30 {dimension_numbers = #tpu.dot_dimension_numbers<[1], [0], [0], [1], [0, 0, 1, 1], [], []>} : vector<16x8xf32>, vector<8x64xf32>, vector<16x64xf32> -> vector<16x64xf32>
    %68 = arith.mulf %67, %65 : vector<16x64xf32>
    %69 = arith.addf %64, %68 : vector<16x64xf32>
    %70 = vector.extract_strided_slice %18 {offsets = [32, 64], sizes = [16, 64], strides = [1, 1]} : vector<64x128xf32> to vector<16x64xf32>
    %71 = arith.mulf %52, %58 : vector<16x8xf32>
    %cst_31 = arith.constant dense<0.000000e+00> : vector<16x64xf32>
    %72 = tpu.matmul %71, %2, %cst_31 {dimension_numbers = #tpu.dot_dimension_numbers<[1], [0], [0], [1], [0, 0, 1, 1], [], []>} : vector<16x8xf32>, vector<8x64xf32>, vector<16x64xf32> -> vector<16x64xf32>
    %73 = arith.mulf %72, %70 : vector<16x64xf32>
    %74 = arith.addf %69, %73 : vector<16x64xf32>
    %75 = vector.extract_strided_slice %18 {offsets = [48, 64], sizes = [16, 64], strides = [1, 1]} : vector<64x128xf32> to vector<16x64xf32>
    %76 = arith.mulf %54, %58 : vector<16x8xf32>
    %cst_32 = arith.constant dense<0.000000e+00> : vector<16x64xf32>
    %77 = tpu.matmul %76, %2, %cst_32 {dimension_numbers = #tpu.dot_dimension_numbers<[1], [0], [0], [1], [0, 0, 1, 1], [], []>} : vector<16x8xf32>, vector<8x64xf32>, vector<16x64xf32> -> vector<16x64xf32>
    %78 = arith.mulf %77, %75 : vector<16x64xf32>
    %79 = arith.addf %74, %78 : vector<16x64xf32>
    %c0_33 = arith.constant 0 : index
    %c0_34 = arith.constant 0 : index
    %80 = vector.load %arg9[%c0_33, %c0_34] : memref<64x64xf32, #tpu.memory_space<vmem>>, vector<64x64xf32>
    %cst_35 = arith.constant dense<0.000000e+00> : vector<16x64xf32>
    %81 = tpu.matmul %79, %80, %cst_35 {dimension_numbers = #tpu.dot_dimension_numbers<[1], [0], [0], [1], [0, 0, 1, 1], [], []>} : vector<16x64xf32>, vector<64x64xf32>, vector<16x64xf32> -> vector<16x64xf32>
    %c0_36 = arith.constant 0 : index
    %c0_37 = arith.constant 0 : index
    %82 = vector.load %arg10[%c0_36, %c0_37] : memref<1x64xf32, #tpu.memory_space<vmem>>, vector<1x64xf32>
    %83 = vector.broadcast %82 : vector<1x64xf32> to vector<16x64xf32>
    %84 = arith.addf %81, %83 : vector<16x64xf32>
    %cst_38 = arith.constant 0.000000e+00 : f32
    %85 = vector.broadcast %cst_38 : f32 to vector<16x64xf32>
    %86 = arith.maximumf %84, %85 : vector<16x64xf32>
    %c0_39 = arith.constant 0 : index
    %c0_40 = arith.constant 0 : index
    %87 = vector.load %arg11[%c0_39, %c0_40] : memref<1x64xf32, #tpu.memory_space<vmem>>, vector<1x64xf32>
    %88 = vector.broadcast %87 : vector<1x64xf32> to vector<16x64xf32>
    %89 = arith.addf %86, %88 : vector<16x64xf32>
    %c0_41 = arith.constant 0 : index
    %c0_42 = arith.constant 0 : index
    %90 = vector.load %arg12[%c0_41, %c0_42] : memref<64x64xf32, #tpu.memory_space<vmem>>, vector<64x64xf32>
    %c0_43 = arith.constant 0 : index
    %c0_44 = arith.constant 0 : index
    %91 = vector.load %arg13[%c0_43, %c0_44] : memref<64x128xf32, #tpu.memory_space<vmem>>, vector<64x128xf32>
    %c0_45 = arith.constant 0 : index
    %c0_46 = arith.constant 0 : index
    %c0_47 = arith.constant 0 : index
    %92 = vector.load %arg3[%c0_45, %c0_46, %c0_47] : memref<16x3x64xf32, #tpu.memory_space<vmem>>, vector<16x1x64xf32>
    %93 = vector.shape_cast %92 : vector<16x1x64xf32> to vector<16x64xf32>
    %c0_48 = arith.constant 0 : index
    %c1_49 = arith.constant 1 : index
    %c0_50 = arith.constant 0 : index
    %94 = vector.load %arg3[%c0_48, %c1_49, %c0_50] : memref<16x3x64xf32, #tpu.memory_space<vmem>>, vector<16x1x64xf32>
    %95 = vector.shape_cast %94 : vector<16x1x64xf32> to vector<16x64xf32>
    %c0_51 = arith.constant 0 : index
    %c2_52 = arith.constant 2 : index
    %c0_53 = arith.constant 0 : index
    %96 = vector.load %arg3[%c0_51, %c2_52, %c0_53] : memref<16x3x64xf32, #tpu.memory_space<vmem>>, vector<16x1x64xf32>
    %97 = vector.shape_cast %96 : vector<16x1x64xf32> to vector<16x64xf32>
    %98 = tpu.concatenate %93, %95, %97, %89 in 0 : vector<16x64xf32>, vector<16x64xf32>, vector<16x64xf32>, vector<16x64xf32> -> vector<64x64xf32>
    %cst_54 = arith.constant dense<0.000000e+00> : vector<64x128xf32>
    %99 = tpu.matmul %98, %91, %cst_54 {dimension_numbers = #tpu.dot_dimension_numbers<[1], [0], [0], [1], [0, 0, 1, 1], [], []>} : vector<64x64xf32>, vector<64x128xf32>, vector<64x128xf32> -> vector<64x128xf32>
    %cst_55 = arith.constant dense<0.000000e+00> : vector<16x64xf32>
    %100 = tpu.matmul %89, %90, %cst_55 {dimension_numbers = #tpu.dot_dimension_numbers<[1], [0], [0], [1], [0, 0, 1, 1], [], []>} : vector<16x64xf32>, vector<64x64xf32>, vector<16x64xf32> -> vector<16x64xf32>
    %101 = vector.extract_strided_slice %99 {offsets = [0, 0], sizes = [16, 64], strides = [1, 1]} : vector<64x128xf32> to vector<16x64xf32>
    %102 = arith.mulf %100, %101 : vector<16x64xf32>
    %cst_56 = arith.constant dense<0.000000e+00> : vector<16x8xf32>
    %103 = tpu.matmul %102, %1, %cst_56 {dimension_numbers = #tpu.dot_dimension_numbers<[1], [0], [0], [1], [0, 0, 1, 1], [], []>} : vector<16x64xf32>, vector<64x8xf32>, vector<16x8xf32> -> vector<16x8xf32>
    %104 = vector.extract_strided_slice %0 {offsets = [0, 0], sizes = [16, 1], strides = [1, 1]} : vector<16x4xf32> to vector<16x1xf32>
    %105 = vector.broadcast %104 : vector<16x1xf32> to vector<16x8xf32>
    %106 = arith.addf %103, %105 : vector<16x8xf32>
    %107 = vector.extract_strided_slice %99 {offsets = [16, 0], sizes = [16, 64], strides = [1, 1]} : vector<64x128xf32> to vector<16x64xf32>
    %108 = arith.mulf %100, %107 : vector<16x64xf32>
    %cst_57 = arith.constant dense<0.000000e+00> : vector<16x8xf32>
    %109 = tpu.matmul %108, %1, %cst_57 {dimension_numbers = #tpu.dot_dimension_numbers<[1], [0], [0], [1], [0, 0, 1, 1], [], []>} : vector<16x64xf32>, vector<64x8xf32>, vector<16x8xf32> -> vector<16x8xf32>
    %110 = vector.extract_strided_slice %0 {offsets = [0, 1], sizes = [16, 1], strides = [1, 1]} : vector<16x4xf32> to vector<16x1xf32>
    %111 = vector.broadcast %110 : vector<16x1xf32> to vector<16x8xf32>
    %112 = arith.addf %109, %111 : vector<16x8xf32>
    %113 = vector.extract_strided_slice %99 {offsets = [32, 0], sizes = [16, 64], strides = [1, 1]} : vector<64x128xf32> to vector<16x64xf32>
    %114 = arith.mulf %100, %113 : vector<16x64xf32>
    %cst_58 = arith.constant dense<0.000000e+00> : vector<16x8xf32>
    %115 = tpu.matmul %114, %1, %cst_58 {dimension_numbers = #tpu.dot_dimension_numbers<[1], [0], [0], [1], [0, 0, 1, 1], [], []>} : vector<16x64xf32>, vector<64x8xf32>, vector<16x8xf32> -> vector<16x8xf32>
    %116 = vector.extract_strided_slice %0 {offsets = [0, 2], sizes = [16, 1], strides = [1, 1]} : vector<16x4xf32> to vector<16x1xf32>
    %117 = vector.broadcast %116 : vector<16x1xf32> to vector<16x8xf32>
    %118 = arith.addf %115, %117 : vector<16x8xf32>
    %119 = vector.extract_strided_slice %99 {offsets = [48, 0], sizes = [16, 64], strides = [1, 1]} : vector<64x128xf32> to vector<16x64xf32>
    %120 = arith.mulf %100, %119 : vector<16x64xf32>
    %cst_59 = arith.constant dense<0.000000e+00> : vector<16x8xf32>
    %121 = tpu.matmul %120, %1, %cst_59 {dimension_numbers = #tpu.dot_dimension_numbers<[1], [0], [0], [1], [0, 0, 1, 1], [], []>} : vector<16x64xf32>, vector<64x8xf32>, vector<16x8xf32> -> vector<16x8xf32>
    %122 = vector.extract_strided_slice %0 {offsets = [0, 3], sizes = [16, 1], strides = [1, 1]} : vector<16x4xf32> to vector<16x1xf32>
    %123 = vector.broadcast %122 : vector<16x1xf32> to vector<16x8xf32>
    %124 = arith.addf %121, %123 : vector<16x8xf32>
    %125 = arith.maximumf %106, %112 : vector<16x8xf32>
    %126 = arith.maximumf %125, %118 : vector<16x8xf32>
    %127 = arith.maximumf %126, %124 : vector<16x8xf32>
    %128 = arith.subf %106, %127 : vector<16x8xf32>
    %129 = math.exp %128 : vector<16x8xf32>
    %130 = arith.subf %112, %127 : vector<16x8xf32>
    %131 = math.exp %130 : vector<16x8xf32>
    %132 = arith.subf %118, %127 : vector<16x8xf32>
    %133 = math.exp %132 : vector<16x8xf32>
    %134 = arith.subf %124, %127 : vector<16x8xf32>
    %135 = math.exp %134 : vector<16x8xf32>
    %136 = arith.addf %129, %131 : vector<16x8xf32>
    %137 = arith.addf %136, %133 : vector<16x8xf32>
    %138 = arith.addf %137, %135 : vector<16x8xf32>
    %139 = tpu.reciprocal %138 {approx = true} : vector<16x8xf32> -> vector<16x8xf32>
    %cst_60 = arith.constant 0.000000e+00 : f32
    %140 = vector.broadcast %cst_60 : f32 to vector<16x64xf32>
    %141 = vector.extract_strided_slice %99 {offsets = [0, 64], sizes = [16, 64], strides = [1, 1]} : vector<64x128xf32> to vector<16x64xf32>
    %142 = arith.mulf %129, %139 : vector<16x8xf32>
    %cst_61 = arith.constant dense<0.000000e+00> : vector<16x64xf32>
    %143 = tpu.matmul %142, %2, %cst_61 {dimension_numbers = #tpu.dot_dimension_numbers<[1], [0], [0], [1], [0, 0, 1, 1], [], []>} : vector<16x8xf32>, vector<8x64xf32>, vector<16x64xf32> -> vector<16x64xf32>
    %144 = arith.mulf %143, %141 : vector<16x64xf32>
    %145 = arith.addf %140, %144 : vector<16x64xf32>
    %146 = vector.extract_strided_slice %99 {offsets = [16, 64], sizes = [16, 64], strides = [1, 1]} : vector<64x128xf32> to vector<16x64xf32>
    %147 = arith.mulf %131, %139 : vector<16x8xf32>
    %cst_62 = arith.constant dense<0.000000e+00> : vector<16x64xf32>
    %148 = tpu.matmul %147, %2, %cst_62 {dimension_numbers = #tpu.dot_dimension_numbers<[1], [0], [0], [1], [0, 0, 1, 1], [], []>} : vector<16x8xf32>, vector<8x64xf32>, vector<16x64xf32> -> vector<16x64xf32>
    %149 = arith.mulf %148, %146 : vector<16x64xf32>
    %150 = arith.addf %145, %149 : vector<16x64xf32>
    %151 = vector.extract_strided_slice %99 {offsets = [32, 64], sizes = [16, 64], strides = [1, 1]} : vector<64x128xf32> to vector<16x64xf32>
    %152 = arith.mulf %133, %139 : vector<16x8xf32>
    %cst_63 = arith.constant dense<0.000000e+00> : vector<16x64xf32>
    %153 = tpu.matmul %152, %2, %cst_63 {dimension_numbers = #tpu.dot_dimension_numbers<[1], [0], [0], [1], [0, 0, 1, 1], [], []>} : vector<16x8xf32>, vector<8x64xf32>, vector<16x64xf32> -> vector<16x64xf32>
    %154 = arith.mulf %153, %151 : vector<16x64xf32>
    %155 = arith.addf %150, %154 : vector<16x64xf32>
    %156 = vector.extract_strided_slice %99 {offsets = [48, 64], sizes = [16, 64], strides = [1, 1]} : vector<64x128xf32> to vector<16x64xf32>
    %157 = arith.mulf %135, %139 : vector<16x8xf32>
    %cst_64 = arith.constant dense<0.000000e+00> : vector<16x64xf32>
    %158 = tpu.matmul %157, %2, %cst_64 {dimension_numbers = #tpu.dot_dimension_numbers<[1], [0], [0], [1], [0, 0, 1, 1], [], []>} : vector<16x8xf32>, vector<8x64xf32>, vector<16x64xf32> -> vector<16x64xf32>
    %159 = arith.mulf %158, %156 : vector<16x64xf32>
    %160 = arith.addf %155, %159 : vector<16x64xf32>
    %161 = arith.maximumf %79, %160 : vector<16x64xf32>
    %c0_65 = arith.constant 0 : index
    %c0_66 = arith.constant 0 : index
    %162 = vector.load %arg16[%c0_65, %c0_66] : memref<16x64xf32, #tpu.memory_space<vmem>>, vector<16x64xf32>
    tpu.vector_store %arg16[%c0_65, %c0_66], %161 {strides = array<i32>} : memref<16x64xf32, #tpu.memory_space<vmem>>, vector<16x64xf32>,
    return
  }
  func.func @transform_0(%arg0: i32) -> (i32, i32) {
    %c0_i32 = arith.constant 0 : i32
    %c0_i32_0 = arith.constant 0 : i32
    return %arg0, %c0_i32 : i32, i32
  }
  func.func @transform_1(%arg0: i32) -> (i32, i32, i32) {
    %c0_i32 = arith.constant 0 : i32
    %c0_i32_0 = arith.constant 0 : i32
    %c0_i32_1 = arith.constant 0 : i32
    return %arg0, %c0_i32, %c0_i32_0 : i32, i32, i32
  }
  func.func @transform_2(%arg0: i32) -> (i32, i32, i32) {
    %c0_i32 = arith.constant 0 : i32
    %c0_i32_0 = arith.constant 0 : i32
    %c0_i32_1 = arith.constant 0 : i32
    return %arg0, %c0_i32, %c0_i32_0 : i32, i32, i32
  }
  func.func @transform_3(%arg0: i32) -> (i32, i32) {
    %c0_i32 = arith.constant 0 : i32
    %c0_i32_0 = arith.constant 0 : i32
    return %arg0, %c0_i32 : i32, i32
  }
  func.func @transform_4(%arg0: i32) -> (i32, i32) {
    %c0_i32 = arith.constant 0 : i32
    %c0_i32_0 = arith.constant 0 : i32
    %c0_i32_1 = arith.constant 0 : i32
    return %c0_i32, %c0_i32_0 : i32, i32
  }
  func.func @transform_5(%arg0: i32) -> (i32, i32) {
    %c0_i32 = arith.constant 0 : i32
    %c0_i32_0 = arith.constant 0 : i32
    %c0_i32_1 = arith.constant 0 : i32
    return %c0_i32, %c0_i32_0 : i32, i32
  }
  func.func @transform_6(%arg0: i32) -> (i32, i32) {
    %c0_i32 = arith.constant 0 : i32
    %c0_i32_0 = arith.constant 0 : i32
    %c0_i32_1 = arith.constant 0 : i32
    return %c0_i32, %c0_i32_0 : i32, i32
  }
  func.func @transform_7(%arg0: i32) -> (i32, i32) {
    %c0_i32 = arith.constant 0 : i32
    %c0_i32_0 = arith.constant 0 : i32
    %c0_i32_1 = arith.constant 0 : i32
    return %c0_i32, %c0_i32_0 : i32, i32
  }
  func.func @transform_8(%arg0: i32) -> (i32, i32) {
    %c0_i32 = arith.constant 0 : i32
    %c0_i32_0 = arith.constant 0 : i32
    %c0_i32_1 = arith.constant 0 : i32
    return %c0_i32, %c0_i32_0 : i32, i32
  }
  func.func @transform_9(%arg0: i32) -> (i32, i32) {
    %c0_i32 = arith.constant 0 : i32
    %c0_i32_0 = arith.constant 0 : i32
    %c0_i32_1 = arith.constant 0 : i32
    return %c0_i32, %c0_i32_0 : i32, i32
  }
  func.func @transform_10(%arg0: i32) -> (i32, i32) {
    %c0_i32 = arith.constant 0 : i32
    %c0_i32_0 = arith.constant 0 : i32
    %c0_i32_1 = arith.constant 0 : i32
    return %c0_i32, %c0_i32_0 : i32, i32
  }
  func.func @transform_11(%arg0: i32) -> (i32, i32) {
    %c0_i32 = arith.constant 0 : i32
    %c0_i32_0 = arith.constant 0 : i32
    %c0_i32_1 = arith.constant 0 : i32
    return %c0_i32, %c0_i32_0 : i32, i32
  }
  func.func @transform_12(%arg0: i32) -> (i32, i32) {
    %c0_i32 = arith.constant 0 : i32
    %c0_i32_0 = arith.constant 0 : i32
    %c0_i32_1 = arith.constant 0 : i32
    return %c0_i32, %c0_i32_0 : i32, i32
  }
  func.func @transform_13(%arg0: i32) -> (i32, i32) {
    %c0_i32 = arith.constant 0 : i32
    %c0_i32_0 = arith.constant 0 : i32
    %c0_i32_1 = arith.constant 0 : i32
    return %c0_i32, %c0_i32_0 : i32, i32
  }
  func.func @transform_14(%arg0: i32) -> (i32, i32) {
    %c0_i32 = arith.constant 0 : i32
    %c0_i32_0 = arith.constant 0 : i32
    %c0_i32_1 = arith.constant 0 : i32
    return %c0_i32, %c0_i32_0 : i32, i32
  }
  func.func @transform_15(%arg0: i32) -> (i32, i32) {
    %c0_i32 = arith.constant 0 : i32
    %c0_i32_0 = arith.constant 0 : i32
    return %arg0, %c0_i32 : i32, i32
  }
}

</mosaic_0001>

<bundles_post_ra>
// kernel: tile.9
= control target key start
LH: loop header
LB: loop body
LE: loop exit
PB: predicated region body
PF: predicated region fallthrough
CT: control target
= control target key end

     0   :  { %vm4_vm0 = vcmask 1047556   ;;  %s99_s14 = smov 56   ;;  %s100_s19 = smov 40   ;;  %vm6_vm1 = vcmask 64512   ;;  %vm16_vm2 = vcmask 523712   ;;  %vm26_vm3 = vcmask 458112   ;;  %s196_s0 = inlined_call_operand.vmem [shape: f32[8,8,8], index: 0, kind: input, shape index: {}]   ;;  %s197_s1 = inlined_call_operand.vmem [shape: f32[8,64], index: 1, kind: output, shape index: {}]  }
   0x1   :  { %v78_v0 = vld [vmem:[%s196_s0 + $0x7] ss:$8 sm:$0xf]   ;;  %v82_v3 = vld [vmem:[%s196_s0 + $0x5] ss:$8 sm:$0xf]  }
   0x2   :  { %v79_v1 = vld [vmem:[%s196_s0 + $0x7] ss:$8 sm:$0xf0]   ;;  %v83_v4 = vld [vmem:[%s196_s0 + $0x5] ss:$8 sm:$0xf0]  }
   0x3   :  { %v13_v2 = vsel %vm4_vm0, %v79_v1, %v78_v0  ;;  %v33_v5 = vsel %vm4_vm0, %v83_v4, %v82_v3  ;;  %v80_v6 = vld [vmem:[%s196_s0 + $0x6] ss:$8 sm:$0xf]   ;;  %v84_v9 = vld [vmem:[%s196_s0 + $0x4] ss:$8 sm:$0xf]  }
   0x4   :  { %14 = vrot.lane.b32.xlu0 %v13_v2, %s99_s14  ;;  %v81_v7 = vld [vmem:[%s196_s0 + $0x6] ss:$8 sm:$0xf0]   ;;  %34 = vrot.lane.b32.xlu1 %v33_v5, %s100_s19  ;;  %v85_v10 = vld [vmem:[%s196_s0 + $0x4] ss:$8 sm:$0xf0]  }
   0x5   :  { %v23_v8 = vsel %vm4_vm0, %v81_v7, %v80_v6  ;;  %v86_v11 = vld [vmem:[%s196_s0 + $0x3] ss:$8 sm:$0xf]   ;;  %v43_v12 = vsel %vm4_vm0, %v85_v10, %v84_v9  ;;  %s101_s28 = smov 48   ;;  %s102_s4 = smov 32   ;;  %vm36_vm4 = vcmask 392512  }
   0x6   :  { %v87_v13 = vld [vmem:[%s196_s0 + $0x3] ss:$8 sm:$0xf0]   ;;  %v88_v14 = vld [vmem:[%s196_s0 + $0x2] ss:$8 sm:$0xf]  }
   0x7   :  { %v89_v15 = vld [vmem:[%s196_s0 + $0x2] ss:$8 sm:$0xf0]   ;;  %v53_v16 = vsel %vm4_vm0, %v87_v13, %v86_v11  ;;  %v90_v17 = vld [vmem:[%s196_s0 + $0x1] ss:$8 sm:$0xf]  }
   0x8   :  { %24 = vrot.lane.b32.xlu0 %v23_v8, %s101_s28  ;;  %44 = vrot.lane.b32.xlu1 %v43_v12, %s102_s4  ;;  %v63_v18 = vsel %vm4_vm0, %v89_v15, %v88_v14  ;;  %v91_v19 = vld [vmem:[%s196_s0 + $0x1] ss:$8 sm:$0xf0]   ;;  %v2_v20 = vld [vmem:[%s196_s0] ss:$8 sm:$0xf]  }
   0x9   :  { %v3_v21 = vld [vmem:[%s196_s0] ss:$8 sm:$0xf0]   ;;  %s103_s0 = smov 24   ;;  %s104_s13 = smov 16   ;;  %v73_v23 = vsel %vm4_vm0, %v91_v19, %v90_v17  ;;  %vm46_vm5 = vcmask 326912  }
   0xa   :  { %v5_v22 = vsel %vm4_vm0, %v3_v21, %v2_v20  ;;  %s105_s16 = smov 8   ;;  %vm56_vm6 = vcmask 261312   ;;  %vm66_vm7 = vcmask 195712   ;;  %vm76_vm8 = vcmask 130112  }
   0xb   :  { %7 = vst.msk [vmem:[%s197_s1] sm:$0xff] %vm6_vm1, %v5_v22  }
   0xc   :  { %54 = vrot.lane.b32.xlu0 %v53_v16, %s103_s0  ;;  %64 = vrot.lane.b32.xlu1 %v63_v18, %s104_s13 }
  0x10   :  { %74 = vrot.lane.b32.xlu0 %v73_v23, %s105_s16 }
  0x76   :  { %v15_v24 = vpop.permute.xlu0 %14   ;;  %v35_v25 = vpop.permute.xlu1 %34  }
  0x77   :  { %17 = vst.msk [vmem:[%s197_s1] sm:$0xff] %vm16_vm2, %v15_v24  }
  0x7a   :  { %v25_v26 = vpop.permute.xlu0 %24   ;;  %v45_v27 = vpop.permute.xlu1 %44  }
  0x7b   :  { %27 = vst.msk [vmem:[%s197_s1] sm:$0xff] %vm26_vm3, %v25_v26  }
  0x7c   :  { %37 = vst.msk [vmem:[%s197_s1] sm:$0xff] %vm36_vm4, %v35_v25  }
  0x7d   :  { %47 = vst.msk [vmem:[%s197_s1] sm:$0xff] %vm46_vm5, %v45_v27  }
  0x7e   :  { %v55_v28 = vpop.permute.xlu0 %54   ;;  %v65_v29 = vpop.permute.xlu1 %64  }
  0x7f   :  { %57 = vst.msk [vmem:[%s197_s1] sm:$0xff] %vm56_vm6, %v55_v28  }
  0x80   :  { %67 = vst.msk [vmem:[%s197_s1] sm:$0xff] %vm66_vm7, %v65_v29  }
  0x82   :  { %v75_v30 = vpop.permute.xlu0 %74  }
  0x83   :  { %77 = vst.msk [vmem:[%s197_s1] sm:$0xff] %vm76_vm8, %v75_v30  }

// kernel: sargcn_forward_isolated.1
= control target key start
LH: loop header
LB: loop body
LE: loop exit
PB: predicated region body
PF: predicated region fallthrough
CT: control target
= control target key end

     0   :  { %vm79_vm0 = vcmask 523264   ;;  %vm242_vm1 = vcmask 1041409   ;;  %vm245_vm2 = vcmask 1042434   ;;  %vm248_vm3 = vcmask 1043459   ;;  %s4353_s0 = inlined_call_operand.vmem [shape: f32[16,64], index: 0, kind: input, shape index: {}]   ;;  %s4354_s1 = inlined_call_operand.vmem [shape: f32[16,3,64], index: 1, kind: input, shape index: {}]   ;;  %s4355_s2 = inlined_call_operand.vmem [shape: f32[16,3,64], index: 2, kind: input, shape index: {}]   ;;  %s4356_s3 = inlined_call_operand.vmem [shape: f32[16,4], index: 3, kind: input, shape index: {}]   ;;  %s4357_s4 = inlined_call_operand.vmem [shape: f32[64,64], index: 4, kind: input, shape index: {}]   ;;  %s4358_s5 = inlined_call_operand.vmem [shape: f32[1,64], index: 5, kind: input, shape index: {}]   ;;  %s4359_s6 = inlined_call_operand.vmem [shape: f32[64,64], index: 6, kind: input, shape index: {}]   ;;  %s4360_s7 = inlined_call_operand.vmem [shape: f32[64,128], index: 7, kind: input, shape index: {}]   ;;  %s4361_s8 = inlined_call_operand.vmem [shape: f32[64,64], index: 8, kind: input, shape index: {}]   ;;  %s4362_s9 = inlined_call_operand.vmem [shape: f32[1,64], index: 9, kind: input, shape index: {}]   ;;  %s4363_s10 = inlined_call_operand.vmem [shape: f32[1,64], index: 10, kind: input, shape index: {}]   ;;  %s4364_s11 = inlined_call_operand.vmem [shape: f32[64,64], index: 11, kind: input, shape index: {}]   ;;  %s4365_s12 = inlined_call_operand.vmem [shape: f32[64,128], index: 12, kind: input, shape index: {}]   ;;  %s4366_s13 = inlined_call_operand.vmem [shape: f32[64,8], index: 13, kind: input, shape index: {}]   ;;  %s4367_s14 = inlined_call_operand.vmem [shape: f32[8,64], index: 14, kind: input, shape index: {}]   ;;  %s4368_s15 = inlined_call_operand.hbm [shape: f32[16,64], index: 15, kind: output, shape index: {}]  }
   0x1   :  { %v64_v0 = vld [vmem:[%s4357_s4] sm:$0xff]  ;;  %v65_v1 = vld [vmem:[%s4357_s4 + $0x8] sm:$0xff]  ;;  %v66_v2 = vld [vmem:[%s4357_s4 + $0x10] sm:$0xff]  ;;  %vm251_vm4 = vcmask 1044484   ;;  %vm254_vm5 = vcmask 1045509   ;;  %vm257_vm6 = vcmask 1046534  }
   0x2   :  { %v3177_v3 = vpack.c.bf16 %v65_v1, %v64_v0  ;;  %v67_v4 = vld [vmem:[%s4357_s4 + $0x18] sm:$0xff]  ;;  %v68_v6 = vld [vmem:[%s4357_s4 + $0x20] sm:$0xff]  ;;  %v69_v7 = vld [vmem:[%s4357_s4 + $0x28] sm:$0xff]  ;;  %vm260_vm7 = vcmask 1047559  }
   0x3   :  { %v3181_v5 = vpack.c.bf16 %v67_v4, %v66_v2  ;;  %v62_v8 = vld [vmem:[%s4353_s0] sm:$0xff]  ;;  %v170_v10 = vld [vmem:[%s4360_s7 + $0x8] sm:$0xff]  ;;  %v70_v11 = vld [vmem:[%s4357_s4 + $0x30] sm:$0xff]  ;;  %v3185_v15 = vpack.c.bf16 %v69_v7, %v68_v6 }
   0x4   :  { %3178 = vmatprep.subr.bf16.mxu0 %v3177_v3  ;;  %2869 = vmatprep.mubr.msk.f32.mxu0 %vm79_vm0, %v62_v8  ;;  %v169_v9 = vld [vmem:[%s4360_s7] sm:$0xff]  ;;  %v171_v13 = vld [vmem:[%s4360_s7 + $0x10] sm:$0xff]  ;;  %v172_v14 = vld [vmem:[%s4360_s7 + $0x18] sm:$0xff] }
   0x5   :  { %3180 = vmatpush3.bf16.msra.mxu0 %v3177_v3  ;;  %v3193_v12 = vpack.c.bf16 %v170_v10, %v169_v9  ;;  %v71_v16 = vld [vmem:[%s4357_s4 + $0x38] sm:$0xff]  ;;  %v3197_v17 = vpack.c.bf16 %v172_v14, %v171_v13  ;;  %v173_v18 = vld [vmem:[%s4360_s7 + $0x20] sm:$0xff]  ;;  %v174_v19 = vld [vmem:[%s4360_s7 + $0x28] sm:$0xff] }
   0x6   :  { %3182 = vmatprep.subr.bf16.mxu0 %v3181_v5  ;;  %v177_v20 = vld [vmem:[%s4354_s1] sm:$0x1]  ;;  %v178_v21 = vld [vmem:[%s4354_s1 + $0x4] sm:$0x1]  ;;  %v179_v22 = vld [vmem:[%s4354_s1 + $0x8] sm:$0x1]  ;;  %v3189_v28 = vpack.c.bf16 %v71_v16, %v70_v11  ;;  %v3201_v29 = vpack.c.bf16 %v174_v19, %v173_v18 }
   0x7   :  { %3194 = vmatprep.subr.bf16.mxu1 %v3193_v12  ;;  %v175_v23 = vld [vmem:[%s4360_s7 + $0x30] sm:$0xff]  ;;  %v176_v24 = vld [vmem:[%s4360_s7 + $0x38] sm:$0xff]  ;;  %v180_v25 = vld [vmem:[%s4354_s1 + $0xc] sm:$0x1]  ;;  %v241_v32 = vrot.slane %v178_v21, 7  ;;  %v244_v33 = vrot.slane %v179_v22, 6 }
   0x8   :  { %3196 = vmatpush3.bf16.msra.mxu1 %v3193_v12  ;;  %v181_v26 = vld [vmem:[%s4354_s1 + $0x10] sm:$0x1]  ;;  %v182_v27 = vld [vmem:[%s4354_s1 + $0x14] sm:$0x1]  ;;  %v183_v30 = vld [vmem:[%s4354_s1 + $0x18] sm:$0x1]  ;;  %v3205_v48 = vpack.c.bf16 %v176_v24, %v175_v23 }
   0x9   :  { %3184 = vmatpush3.bf16.msra.mxu0 %v3181_v5  ;;  %3198 = vmatprep.subr.bf16.mxu1 %v3197_v17  ;;  %v184_v31 = vld [vmem:[%s4354_s1 + $0x1c] sm:$0x1]  ;;  %v247_v34 = vrot.slane %v180_v25, 5  ;;  %v250_v35 = vrot.slane %v181_v26, 4  ;;  %v253_v36 = vrot.slane %v182_v27, 3  ;;  %v256_v37 = vrot.slane %v183_v30, 2 }
   0xa   :  { %3186 = vmatprep.subr.bf16.mxu0 %v3185_v15  ;;  %v185_v38 = vld [vmem:[%s4354_s1 + $0x20] sm:$0x1]  ;;  %v243_v39 = vsel %vm242_vm1, %v241_v32, %v177_v20  ;;  %v259_v40 = vrot.slane %v184_v31, 1  ;;  %v186_v41 = vld [vmem:[%s4354_s1 + $0x24] sm:$0x1]  ;;  %v162_v58 = vld [vmem:[%s4359_s6 + $0x8] sm:$0xff] }
   0xb   :  { %v187_v42 = vld [vmem:[%s4354_s1 + $0x28] sm:$0x1]  ;;  %v161_v43 = vld [vmem:[%s4359_s6] sm:$0xff]  ;;  %v246_v44 = vsel %vm245_vm2, %v244_v33, %v243_v39  ;;  %v188_v45 = vld [vmem:[%s4354_s1 + $0x2c] sm:$0x1]  ;;  %v262_v52 = vrot.slane %v186_v41, 7 }
   0xc   :  { %3200 = vmatpush3.bf16.msra.mxu1 %v3197_v17  ;;  %v189_v46 = vld [vmem:[%s4354_s1 + $0x30] sm:$0x1]  ;;  %v190_v47 = vld [vmem:[%s4354_s1 + $0x34] sm:$0x1]  ;;  %v249_v49 = vsel %vm248_vm3, %v247_v34, %v246_v44  ;;  %v191_v50 = vld [vmem:[%s4354_s1 + $0x38] sm:$0x1]  ;;  %v3209_v5 = vpack.c.bf16 %v162_v58, %v161_v43 }
   0xd   :  { %3188 = vmatpush3.bf16.msra.mxu0 %v3185_v15  ;;  %3202 = vmatprep.subr.bf16.mxu1 %v3201_v29  ;;  %v192_v51 = vld [vmem:[%s4354_s1 + $0x3c] sm:$0x1]  ;;  %v264_v53 = vrot.slane %v187_v42, 6  ;;  %v252_v54 = vsel %vm251_vm4, %v250_v35, %v249_v49  ;;  %v266_v55 = vrot.slane %v188_v45, 5  ;;  %v268_v56 = vrot.slane %v189_v46, 4  ;;  %v63_v60 = vld [vmem:[%s4353_s0 + $0x8] sm:$0xff] }
   0xe   :  { %3190 = vmatprep.subr.bf16.mxu0 %v3189_v28  ;;  %v270_v57 = vrot.slane %v190_v47, 3  ;;  %v193_v59 = vld [vmem:[%s4354_s1 + $0x1] sm:$0x1]  ;;  %v255_v61 = vsel %vm254_vm5, %v253_v36, %v252_v54  ;;  %v263_v62 = vsel %vm242_vm1, %v262_v52, %v185_v38  ;;  %v272_v63 = vrot.slane %v191_v50, 2  ;;  %v194_v1 = vld [vmem:[%s4354_s1 + $0x5] sm:$0x1] }
   0xf   :  { %v274_v0 = vrot.slane %v192_v51, 1  ;;  %v195_v2 = vld [vmem:[%s4354_s1 + $0x9] sm:$0x1]  ;;  %v258_v3 = vsel %vm257_vm6, %v256_v37, %v255_v61  ;;  %v265_v4 = vsel %vm245_vm2, %v264_v53, %v263_v62  ;;  %v196_v6 = vld [vmem:[%s4354_s1 + $0xd] sm:$0x1]  ;;  %v292_v13 = vrot.slane %v194_v1, 7 }
  0x10   :  { %3204 = vmatpush3.bf16.msra.mxu1 %v3201_v29  ;;  %v197_v7 = vld [vmem:[%s4354_s1 + $0x11] sm:$0x1]  ;;  %v198_v8 = vld [vmem:[%s4354_s1 + $0x15] sm:$0x1]  ;;  %v261_v9 = vsel %vm260_vm7, %v259_v40, %v258_v3  ;;  %v267_v10 = vsel %vm248_vm3, %v266_v55, %v265_v4  ;;  %v199_v11 = vld [vmem:[%s4354_s1 + $0x19] sm:$0x1] }
  0x11   :  { %3192 = vmatpush3.bf16.msra.mxu0 %v3189_v28  ;;  %3206 = vmatprep.subr.bf16.mxu1 %v3205_v48  ;;  %v200_v12 = vld [vmem:[%s4354_s1 + $0x1d] sm:$0x1]  ;;  %v294_v14 = vrot.slane %v195_v2, 6  ;;  %v269_v15 = vsel %vm251_vm4, %v268_v56, %v267_v10  ;;  %v296_v16 = vrot.slane %v196_v6, 5  ;;  %v298_v17 = vrot.slane %v197_v7, 4  ;;  %v163_v26 = vld [vmem:[%s4359_s6 + $0x10] sm:$0xff] }
  0x12   :  { %2888 = vmatprep.mubr.msk.f32.mxu1 %vm79_vm0, %v261_v9  ;;  %3210 = vmatprep.subr.bf16.mxu0 %v3209_v5  ;;  %v300_v18 = vrot.slane %v198_v8, 3  ;;  %v201_v19 = vld [vmem:[%s4354_s1 + $0x21] sm:$0x1]  ;;  %v271_v20 = vsel %vm254_vm5, %v270_v57, %v269_v15  ;;  %v293_v21 = vsel %vm242_vm1, %v292_v13, %v193_v59  ;;  %v302_v22 = vrot.slane %v199_v11, 2  ;;  %v202_v24 = vld [vmem:[%s4354_s1 + $0x25] sm:$0x1] }
  0x13   :  { %v304_v23 = vrot.slane %v200_v12, 1  ;;  %v203_v25 = vld [vmem:[%s4354_s1 + $0x29] sm:$0x1]  ;;  %v273_v27 = vsel %vm257_vm6, %v272_v63, %v271_v20  ;;  %v295_v28 = vsel %vm245_vm2, %v294_v14, %v293_v21  ;;  %v204_v29 = vld [vmem:[%s4354_s1 + $0x2d] sm:$0x1]  ;;  %v306_v36 = vrot.slane %v202_v24, 7 }
  0x14   :  { %2870 = vmatmul.mubr.msk.f32.vlgmr.msra.gmra.mrb[0].mxu0 %vm79_vm0, %v63_v60  ;;  %3208 = vmatpush3.bf16.msra.mxu1 %v3205_v48  ;;  %v205_v30 = vld [vmem:[%s4354_s1 + $0x31] sm:$0x1]  ;;  %v206_v31 = vld [vmem:[%s4354_s1 + $0x35] sm:$0x1]  ;;  %v275_v32 = vsel %vm260_vm7, %v274_v0, %v273_v27  ;;  %v297_v33 = vsel %vm248_vm3, %v296_v16, %v295_v28  ;;  %v207_v34 = vld [vmem:[%s4354_s1 + $0x39] sm:$0x1] }
  0x15   :  { %3212 = vmatpush3.bf16.msra.mxu0 %v3209_v5  ;;  %v208_v35 = vld [vmem:[%s4354_s1 + $0x3d] sm:$0x1]  ;;  %v308_v37 = vrot.slane %v203_v25, 6  ;;  %v299_v38 = vsel %vm251_vm4, %v298_v17, %v297_v33  ;;  %v310_v39 = vrot.slane %v204_v29, 5  ;;  %v312_v40 = vrot.slane %v205_v30, 4  ;;  %v165_v42 = vld [vmem:[%s4359_s6 + $0x20] sm:$0xff] }
  0x16   :  { %v164_v41 = vld [vmem:[%s4359_s6 + $0x18] sm:$0xff]  ;;  %v166_v43 = vld [vmem:[%s4359_s6 + $0x28] sm:$0xff]  ;;  %v301_v44 = vsel %vm254_vm5, %v300_v18, %v299_v38  ;;  %v307_v45 = vsel %vm242_vm1, %v306_v36, %v201_v19  ;;  %v314_v46 = vrot.slane %v206_v31, 3  ;;  %v316_v47 = vrot.slane %v207_v34, 2 }
  0x17   :  { %2889 = vmatmul.mubr.msk.f32.vlgmr.msra.gmra.mrb[0].mxu1 %vm79_vm0, %v275_v32 }
  0x18   :  { %20 = vsyncpa [#allocation3], 0  ;;  %v303_v48 = vsel %vm257_vm6, %v302_v22, %v301_v44  ;;  %v309_v49 = vsel %vm245_vm2, %v308_v37, %v307_v45  ;;  %v3213_v50 = vpack.c.bf16 %v164_v41, %v163_v26  ;;  %v3217_v51 = vpack.c.bf16 %v166_v43, %v165_v42  ;;  %v210_v59 = vld [vmem:[%s4354_s1 + $0x6] sm:$0x1]  ;;  %v211_v60 = vld [vmem:[%s4354_s1 + $0xa] sm:$0x1] }
  0x19   :  { %v305_v52 = vsel %vm260_vm7, %v304_v23, %v303_v48  ;;  %v311_v53 = vsel %vm248_vm3, %v310_v39, %v309_v49  ;;  %v318_v54 = vrot.slane %v208_v35, 1  ;;  %v336_v61 = vrot.slane %v210_v59, 7  ;;  %v218_v62 = vld [vmem:[%s4354_s1 + $0x26] sm:$0x1]  ;;  %v209_v63 = vld [vmem:[%s4354_s1 + $0x2] sm:$0x1] }
  0x1a   :  { %2891 = vmatprep.mubr.msk.f32.mxu1 %vm79_vm0, %v305_v52  ;;  %v313_v55 = vsel %vm251_vm4, %v312_v40, %v311_v53  ;;  %3214 = vmatprep.subr.bf16.mxu0 %v3213_v50  ;;  %v212_v0 = vld [vmem:[%s4354_s1 + $0xe] sm:$0x1]  ;;  %v338_v1 = vrot.slane %v211_v60, 6  ;;  %v350_v2 = vrot.slane %v218_v62, 7  ;;  %v213_v3 = vld [vmem:[%s4354_s1 + $0x12] sm:$0x1] }
  0x1b   :  { %v315_v56 = vsel %vm254_vm5, %v314_v46, %v313_v55  ;;  %3216 = vmatpush3.bf16.msra.mxu0 %v3213_v50  ;;  %v337_v4 = vsel %vm242_vm1, %v336_v61, %v209_v63  ;;  %v340_v5 = vrot.slane %v212_v0, 5  ;;  %v217_v6 = vld [vmem:[%s4354_s1 + $0x22] sm:$0x1]  ;;  %v214_v7 = vld [vmem:[%s4354_s1 + $0x16] sm:$0x1]  ;;  %v342_v9 = vrot.slane %v213_v3, 4 }
  0x1c   :  { %v317_v57 = vsel %vm257_vm6, %v316_v47, %v315_v56  ;;  %3218 = vmatprep.subr.bf16.mxu0 %v3217_v51  ;;  %v339_v8 = vsel %vm245_vm2, %v338_v1, %v337_v4  ;;  %v219_v10 = vld [vmem:[%s4354_s1 + $0x2a] sm:$0x1]  ;;  %v351_v11 = vsel %vm242_vm1, %v350_v2, %v217_v6  ;;  %v215_v12 = vld [vmem:[%s4354_s1 + $0x1a] sm:$0x1]  ;;  %v344_v14 = vrot.slane %v214_v7, 3  ;;  %v167_v33 = vld [vmem:[%s4359_s6 + $0x30] sm:$0xff] }
  0x1d   :  { %v319_v58 = vsel %vm260_vm7, %v318_v54, %v317_v57  ;;  %v341_v13 = vsel %vm248_vm3, %v340_v5, %v339_v8  ;;  %v220_v15 = vld [vmem:[%s4354_s1 + $0x2e] sm:$0x1]  ;;  %v352_v16 = vrot.slane %v219_v10, 6  ;;  %v216_v17 = vld [vmem:[%s4354_s1 + $0x1e] sm:$0x1]  ;;  %v346_v19 = vrot.slane %v215_v12, 2 }
  0x1e   :  { %2892 = vmatmul.mubr.msk.f32.gmra.mrb[2].mxu1 %vm79_vm0, %v319_v58  ;;  %v343_v18 = vsel %vm251_vm4, %v342_v9, %v341_v13  ;;  %v221_v20 = vld [vmem:[%s4354_s1 + $0x32] sm:$0x1]  ;;  %v354_v21 = vrot.slane %v220_v15, 5  ;;  %v348_v23 = vrot.slane %v216_v17, 1  ;;  %v222_v24 = vld [vmem:[%s4354_s1 + $0x36] sm:$0x1] }
  0x1f   :  { %3220 = vmatpush3.bf16.msra.mxu0 %v3217_v51  ;;  %v345_v22 = vsel %vm254_vm5, %v344_v14, %v343_v18  ;;  %v223_v25 = vld [vmem:[%s4354_s1 + $0x3a] sm:$0x1]  ;;  %v353_v26 = vsel %vm245_vm2, %v352_v16, %v351_v11  ;;  %v356_v27 = vrot.slane %v221_v20, 4  ;;  %v224_v29 = vld [vmem:[%s4354_s1 + $0x3e] sm:$0x1]  ;;  %v358_v31 = vrot.slane %v222_v24, 3 }
  0x20   :  { %v347_v28 = vsel %vm257_vm6, %v346_v19, %v345_v22  ;;  %v355_v30 = vsel %vm248_vm3, %v354_v21, %v353_v26  ;;  %v360_v32 = vrot.slane %v223_v25, 2  ;;  %v168_v34 = vld [vmem:[%s4359_s6 + $0x38] sm:$0xff]  ;;  %v362_v37 = vrot.slane %v224_v29, 1  ;;  %v52_v42 = vld [vmem:[%s4356_s3 + $0x8] sm:$0xff]  ;;  %v51_v43 = vld [vmem:[%s4356_s3] sm:$0xff]  ;;  %s3485_s26 = smov 64  }
  0x21   :  { %v349_v35 = vsel %vm260_vm7, %v348_v23, %v347_v28  ;;  %v357_v36 = vsel %vm251_vm4, %v356_v27, %v355_v30  ;;  %v3221_v38 = vpack.c.bf16 %v168_v34, %v167_v33  ;;  %v3481_v44 = vmov 0   ;;  %v53_v45 = vld [vmem:[%s4366_s13] sm:$0xff]  ;;  %v54_v46 = vld [vmem:[%s4366_s13 + $0x8] sm:$0xff]  ;;  %v55_v49 = vld [vmem:[%s4366_s13 + $0x10] sm:$0xff] }
  0x22   :  { %2894 = vmatprep.mubr.msk.f32.mxu1 %vm79_vm0, %v349_v35  ;;  %v359_v39 = vsel %vm254_vm5, %v358_v31, %v357_v36  ;;  %3411 = vset.pattern.permute.xlu1 %v3481_v44  ;;  %v3482_v47 = vmov 1   ;;  %v3853_v48 = vpack.c.bf16 %v54_v46, %v53_v45  ;;  %v56_v50 = vld [vmem:[%s4366_s13 + $0x18] sm:$0xff]  ;;  %v3483_v52 = vmov 2   ;;  %v57_v54 = vld [vmem:[%s4366_s13 + $0x20] sm:$0xff]  ;;  %v58_v55 = vld [vmem:[%s4366_s13 + $0x28] sm:$0xff] }
  0x23   :  { %v361_v40 = vsel %vm257_vm6, %v360_v32, %v359_v39  ;;  %3222 = vmatprep.subr.bf16.mxu0 %v3221_v38  ;;  %3409 = vset.pattern.permute.xlu0 %v3481_v44  ;;  %v3861_v51 = vpack.c.bf16 %v56_v50, %v55_v49  ;;  %v3484_v53 = vmov 3   ;;  %v3874_v56 = vpack.c.bf16 %v58_v55, %v57_v54  ;;  %v2618_v57 = vld [vmem:[%s4358_s5] ss:$0 sm:$0xff]  ;;  %v59_v2 = vld [vmem:[%s4366_s13 + $0x30] sm:$0xff]  ;;  %v60_v3 = vld [vmem:[%s4366_s13 + $0x38] sm:$0xff] }
  0x24   :  { %v363_v41 = vsel %vm260_vm7, %v362_v37, %v361_v40  ;;  %3224 = vmatpush3.bf16.msra.mxu0 %v3221_v38  ;;  %571 = vperm.xlu1 %3411, %v52_v42   ;;  %v3900_v5 = vpack.c.bf16 %v60_v3, %v59_v2  ;;  %v3937_v19 = vld [vmem:[%s4367_s14] sm:$0xff]  ;;  %vm968_vm8 = vcmask 64512  }
  0x25   :  { %2895 = vmatmul.mubr.msk.f32.gmra.mrb[4].mxu1 %vm79_vm0, %v363_v41  ;;  %566 = vperm.xlu0 %3409, %v51_v43  }
  0x26   :  { %3226 = vmatprep.subr.bf16.mxu1 %v3853_v48  ;;  %3242 = vmatprep.subr.bf16.mxu0 %v3853_v48 }
  0x27   :  { %3228 = vmatpush3.bf16.msra.mxu1 %v3853_v48 }
  0x28   :  { %3412 = vset.pattern.permute.xlu1 %v3482_v47  ;;  %3230 = vmatprep.subr.bf16.mxu1 %v3861_v51 }
  0x29   :  { %3410 = vset.pattern.permute.xlu0 %v3482_v47  ;;  %662 = vperm.xlu1 %3412, %v52_v42  }
  0x2a   :  { %658 = vperm.xlu0 %3410, %v51_v43  }
  0x2b   :  { %3232 = vmatpush3.bf16.msra.mxu1 %v3861_v51 }
  0x2c   :  { %3234 = vmatprep.subr.bf16.mxu1 %v3874_v56 }
  0x2d   :  { %3413 = vset.pattern.permute.xlu1 %v3483_v52 }
  0x2e   :  { %3414 = vset.pattern.permute.xlu0 %v3483_v52  ;;  %749 = vperm.xlu1 %3413, %v51_v43  }
  0x2f   :  { %753 = vperm.xlu0 %3414, %v52_v42   ;;  %3236 = vmatpush3.bf16.msra.mxu1 %v3874_v56 }
  0x30   :  { %3238 = vmatprep.subr.bf16.mxu1 %v3900_v5 }
  0x32   :  { %3415 = vset.pattern.permute.xlu1 %v3484_v53 }
  0x33   :  { %3416 = vset.pattern.permute.xlu0 %v3484_v53  ;;  %840 = vperm.xlu1 %3415, %v51_v43  }
  0x34   :  { %3240 = vmatpush3.bf16.msra.mxu1 %v3900_v5 }
  0x35   :  { %3258 = vmatprep.subr.bf16.mxu1 %v3853_v48 }
  0x37   :  { %844 = vperm.xlu1 %3415, %v52_v42  }
  0xa3   :  { %v3942_v20 = vpop.permute.xlu1 %571 }
  0xa4   :  { %v3944_v21 = vpop.permute.xlu0 %566 }
  0xa8   :  { %v3946_v22 = vpop.permute.xlu1 %662 }
  0xa9   :  { %v3948_v23 = vpop.permute.xlu0 %658 }
  0xad   :  { %v3954_v34 = vpop.permute.xlu1 %749 }
  0xae   :  { %v3958_v36 = vpop.permute.xlu0 %753 }
  0xb2   :  { %v3956_v35 = vpop.permute.xlu1 %840 }
  0xb6   :  { %v3961_v42 = vpop.permute.xlu1 %844 }
  0xe7   :  { %v2871_v58 = vpop.f32.mrb[0].mxu0 }
  0xe8   :  { %v152_v59 = vpop.f32.mrb[1].mxu0  ;;  %v158_v61 = vadd.f32 %v2871_v58, %v2618_v57 }
  0xe9   :  { %v153_v60 = vadd.f32 %v2618_v57, %v152_v59 }
  0xea   :  { %v2890_v62 = vpop.f32.mrb[0].mxu1 }
  0xeb   :  { %2897 = vmatprep.mubr.msk.f32.mxu1 %vm79_vm0, %v153_v60  ;;  %2916 = vmatprep.mubr.msk.f32.mxu0 %vm79_vm0, %v153_v60  ;;  %v448_v63 = vpop.f32.mrb[1].mxu1 }
  0xec   :  { %2898 = vmatmul.mubr.msk.f32.gmra.mrb[6].mxu1 %vm79_vm0, %v158_v61  ;;  %2917 = vmatmul.mubr.msk.f32.vlgmr.msra.gmra.mrb[2].mxu0 %vm79_vm0, %v158_v61 }
  0xed   :  { %3244 = vmatpush3.bf16.msra.mxu0 %v3853_v48  ;;  %1054 = vrot.lane.b32.xlu0 %v2890_v62, %s3485_s26 }
  0xee   :  { %3246 = vmatprep.subr.bf16.mxu0 %v3861_v51 }
  0xf1   :  { %v2893_v0 = vpop.f32.mrb[2].mxu1  ;;  %3248 = vmatpush3.bf16.msra.mxu0 %v3861_v51  ;;  %1052 = vrot.lane.b32.xlu0 %v448_v63, %s3485_s26 }
  0xf2   :  { %1149 = vrot.lane.b32.xlu1 %v2893_v0, %s3485_s26  ;;  %v458_v1 = vpop.f32.mrb[3].mxu1  ;;  %3250 = vmatprep.subr.bf16.mxu0 %v3874_v56 }
  0xf5   :  { %3252 = vmatpush3.bf16.msra.mxu0 %v3874_v56 }
  0xf6   :  { %1147 = vrot.lane.b32.xlu1 %v458_v1, %s3485_s26  ;;  %3254 = vmatprep.subr.bf16.mxu0 %v3900_v5 }
  0xf8   :  { %v2896_v4 = vpop.f32.mrb[4].mxu1 }
  0xf9   :  { %v468_v6 = vpop.f32.mrb[5].mxu1  ;;  %3256 = vmatpush3.bf16.msra.mxu0 %v3900_v5 }
  0xfa   :  { %1244 = vrot.lane.b32.xlu1 %v2896_v4, %s3485_s26  ;;  %1242 = vrot.lane.b32.xlu0 %v468_v6, %s3485_s26 }
  0xfb   :  { %3274 = vmatprep.subr.bf16.mxu0 %v3853_v48 }
 0x1bf   :  { %v2899_v7 = vpop.f32.mrb[6].mxu1  ;;  %v2918_v8 = vpop.f32.mrb[2].mxu0 }
 0x1c0   :  { %v563_v9 = vmul.f32 %v2918_v8, %v2890_v62  ;;  %v656_v10 = vmul.f32 %v2918_v8, %v2893_v0  ;;  %v747_v11 = vmul.f32 %v2918_v8, %v2896_v4  ;;  %v838_v12 = vmul.f32 %v2918_v8, %v2899_v7  ;;  %v478_v13 = vpop.f32.mrb[7].mxu1  ;;  %v553_v14 = vpop.f32.mrb[3].mxu0  ;;  %1339 = vrot.lane.b32.xlu1 %v2899_v7, %s3485_s26 }
 0x1c1   :  { %v562_v15 = vmul.f32 %v553_v14, %v448_v63  ;;  %v655_v16 = vmul.f32 %v553_v14, %v458_v1  ;;  %v746_v17 = vmul.f32 %v553_v14, %v468_v6  ;;  %v837_v18 = vmul.f32 %v553_v14, %v478_v13  ;;  %1337 = vrot.lane.b32.xlu0 %v478_v13, %s3485_s26 }
 0x1c3   :  { %2935 = vmatprep.mubr.msk.f32.mxu1 %vm79_vm0, %v562_v15  ;;  %2954 = vmatprep.mubr.msk.f32.mxu0 %vm79_vm0, %v655_v16 }
 0x1c4   :  { %2936 = vmatmul.mubr.msk.f32.vlgmr.msra.gmra.mrb[8].mxu1 %vm79_vm0, %v563_v9  ;;  %2955 = vmatmul.mubr.msk.f32.vlgmr.msra.gmra.mrb[4].mxu0 %vm79_vm0, %v656_v10 }
 0x1c5   :  { %3260 = vmatpush3.bf16.msra.mxu1 %v3853_v48  ;;  %3276 = vmatpush3.bf16.msra.mxu0 %v3853_v48 }
 0x1c6   :  { %2973 = vmatprep.mubr.msk.f32.mxu1 %vm79_vm0, %v746_v17  ;;  %2992 = vmatprep.mubr.msk.f32.mxu0 %vm79_vm0, %v837_v18 }
 0x1c7   :  { %3262 = vmatprep.subr.bf16.mxu1 %v3861_v51  ;;  %3278 = vmatprep.subr.bf16.mxu0 %v3861_v51 }
 0x1c9   :  { %3264 = vmatpush3.bf16.msra.mxu1 %v3861_v51  ;;  %3280 = vmatpush3.bf16.msra.mxu0 %v3861_v51 }
 0x1ca   :  { %3266 = vmatprep.subr.bf16.mxu1 %v3874_v56  ;;  %3282 = vmatprep.subr.bf16.mxu0 %v3874_v56 }
 0x1cd   :  { %3268 = vmatpush3.bf16.msra.mxu1 %v3874_v56  ;;  %3284 = vmatpush3.bf16.msra.mxu0 %v3874_v56 }
 0x1ce   :  { %3270 = vmatprep.subr.bf16.mxu1 %v3900_v5  ;;  %3286 = vmatprep.subr.bf16.mxu0 %v3900_v5 }
 0x1d1   :  { %3272 = vmatpush3.bf16.msra.mxu1 %v3900_v5  ;;  %3288 = vmatpush3.bf16.msra.mxu0 %v3900_v5 }
 0x1d2   :  { %2995 = vmatprep.subr.mxu1 %v3937_v19 }
 0x1d4   :  { %2974 = vmatmul.mubr.msk.f32.vlgmr.msra.gmra.mrb[10].mxu1 %vm79_vm0, %v747_v11  ;;  %2993 = vmatmul.mubr.msk.f32.vlgmr.msra.gmra.mrb[6].mxu0 %vm79_vm0, %v838_v12 }
 0x1d5   :  { %2996 = vmatpush3.msra.mxu1 %v3937_v19 }
 0x1d6   :  { %3000 = vmatprep.subr.mxu1 %v3937_v19 }
 0x297   :  { %v2937_v24 = vpop.f32.mrb[8].mxu1  ;;  %v2956_v25 = vpop.f32.mrb[4].mxu0 }
 0x298   :  { %v652_v26 = vadd.f32 %v2937_v24, %v3942_v20  ;;  %v743_v27 = vadd.f32 %v2956_v25, %v3946_v22  ;;  %v646_v28 = vpop.f32.mrb[9].mxu1  ;;  %v737_v29 = vpop.f32.mrb[5].mxu0 }
 0x299   :  { %v647_v30 = vadd.f32 %v646_v28, %v3944_v21  ;;  %v738_v31 = vadd.f32 %v737_v29, %v3948_v23 }
 0x29a   :  { %v929_v32 = vmax.f32 %v652_v26, %v743_v27 }
 0x29b   :  { %v928_v33 = vmax.f32 %v647_v30, %v738_v31 }
 0x2a7   :  { %v2975_v37 = vpop.f32.mrb[10].mxu1  ;;  %v2994_v38 = vpop.f32.mrb[6].mxu0 }
 0x2a8   :  { %v834_v39 = vadd.f32 %v2975_v37, %v3958_v36  ;;  %v828_v40 = vpop.f32.mrb[11].mxu1  ;;  %v919_v41 = vpop.f32.mrb[7].mxu0  ;;  %v925_v45 = vadd.f32 %v2994_v38, %v3961_v42  ;;  %v1347_v38 = vld [vmem:[%s4361_s8] sm:$0xff] }
 0x2a9   :  { %v829_v43 = vadd.f32 %v828_v40, %v3954_v34  ;;  %v920_v47 = vadd.f32 %v919_v41, %v3956_v35  ;;  %v1349_v41 = vld [vmem:[%s4361_s8 + $0x10] sm:$0xff] }
 0x2aa   :  { %v931_v44 = vmax.f32 %v929_v32, %v834_v39 }
 0x2ab   :  { %v930_v46 = vmax.f32 %v928_v33, %v829_v43 }
 0x2ac   :  { %v933_v49 = vmax.f32 %v931_v44, %v925_v45 }
 0x2ad   :  { %v932_v50 = vmax.f32 %v930_v46, %v920_v47  ;;  %v1352_v46 = vld [vmem:[%s4361_s8 + $0x28] sm:$0xff] }
 0x2ae   :  { %v935_v52 = vsub.f32 %v652_v26, %v933_v49  ;;  %v941_v53 = vsub.f32 %v743_v27, %v933_v49  ;;  %v947_v54 = vsub.f32 %v834_v39, %v933_v49  ;;  %v953_v55 = vsub.f32 %v925_v45, %v933_v49  ;;  %v1348_v39 = vld [vmem:[%s4361_s8 + $0x8] sm:$0xff]  ;;  %v1351_v45 = vld [vmem:[%s4361_s8 + $0x20] sm:$0xff]  ;;  %v1353_v49 = vld [vmem:[%s4361_s8 + $0x30] sm:$0xff] }
 0x2af   :  { %v934_v57 = vsub.f32 %v647_v30, %v932_v50  ;;  %v940_v58 = vsub.f32 %v738_v31, %v932_v50  ;;  %v946_v59 = vsub.f32 %v829_v43, %v932_v50  ;;  %v952_v60 = vsub.f32 %v920_v47, %v932_v50  ;;  %v1350_v43 = vld [vmem:[%s4361_s8 + $0x18] sm:$0xff] }
 0x2b0   :  { %v938_v61 = vmul.f32 1.442695, %v935_v52  ;;  %v944_v62 = vmul.f32 1.442695, %v941_v53  ;;  %v950_v63 = vmul.f32 1.442695, %v947_v54  ;;  %v3289_v40 = vpack.c.bf16 %v1348_v39, %v1347_v38 }
 0x2b1   :  { %v956_v0 = vmul.f32 1.442695, %v953_v55  ;;  %v936_v1 = vmul.f32 1.442695, %v934_v57  ;;  %v942_v2 = vmul.f32 1.442695, %v940_v58  ;;  %v3293_v44 = vpack.c.bf16 %v1350_v43, %v1349_v41 }
 0x2b2   :  { %3417 = vpow2.f32 %v938_v61  ;;  %v948_v3 = vmul.f32 1.442695, %v946_v59  ;;  %v954_v4 = vmul.f32 1.442695, %v952_v60  ;;  %3290 = vmatprep.subr.bf16.mxu0 %v3289_v40  ;;  %v3297_v47 = vpack.c.bf16 %v1352_v46, %v1351_v45  ;;  %v1354_v50 = vld [vmem:[%s4361_s8 + $0x38] sm:$0xff]  ;;  %v1462_v53 = vld [vmem:[%s4365_s12] sm:$0xff] }
 0x2b3   :  { %3419 = vpow2.f32 %v944_v62  ;;  %3292 = vmatpush3.bf16.msra.mxu0 %v3289_v40  ;;  %v3301_v52 = vpack.c.bf16 %v1354_v50, %v1353_v49  ;;  %v1463_v54 = vld [vmem:[%s4365_s12 + $0x8] sm:$0xff]  ;;  %v1464_v55 = vld [vmem:[%s4365_s12 + $0x10] sm:$0xff]  ;;  %v1465_v58 = vld [vmem:[%s4365_s12 + $0x18] sm:$0xff] }
 0x2b4   :  { %3421 = vpow2.f32 %v950_v63  ;;  %3294 = vmatprep.subr.bf16.mxu0 %v3293_v44  ;;  %v3305_v57 = vpack.c.bf16 %v1463_v54, %v1462_v53  ;;  %v3309_v59 = vpack.c.bf16 %v1465_v58, %v1464_v55  ;;  %v1466_v60 = vld [vmem:[%s4365_s12 + $0x20] sm:$0xff]  ;;  %v1467_v61 = vld [vmem:[%s4365_s12 + $0x28] sm:$0xff]  ;;  %v1484_v38 = vld [vmem:[%s4355_s2 + $0x38] sm:$0x1] }
 0x2b5   :  { %3423 = vpow2.f32 %v956_v0  ;;  %v1454_v62 = vld [vmem:[%s4364_s11] sm:$0xff]  ;;  %v1455_v63 = vld [vmem:[%s4364_s11 + $0x8] sm:$0xff]  ;;  %v1558_v53 = vrot.slane %v1484_v38, 2 }
 0x2b6   :  { %3425 = vpow2.f32 %v936_v1  ;;  %v1471_v0 = vld [vmem:[%s4355_s2 + $0x4] sm:$0x1]  ;;  %v1468_v1 = vld [vmem:[%s4365_s12 + $0x30] sm:$0xff] }
 0x2b7   :  { %3427 = vpow2.f32 %v942_v2  ;;  %3296 = vmatpush3.bf16.msra.mxu0 %v3293_v44  ;;  %v4033_v2 = vpack.c.bf16 %v1455_v63, %v1454_v62  ;;  %v1485_v44 = vld [vmem:[%s4355_s2 + $0x3c] sm:$0x1]  ;;  %v1150_v62 = vpop.permute.xlu1 %1149  ;;  %v1055_v63 = vpop.permute.xlu0 %1054 }
 0x2b8   :  { %3429 = vpow2.f32 %v948_v3  ;;  %3298 = vmatprep.subr.bf16.mxu0 %v3297_v47  ;;  %v1472_v3 = vld [vmem:[%s4355_s2 + $0x8] sm:$0x1] }
 0x2b9   :  { %3431 = vpow2.f32 %v954_v4  ;;  %v1473_v4 = vld [vmem:[%s4355_s2 + $0xc] sm:$0x1] }
 0x2bb   :  { %3300 = vmatpush3.bf16.msra.mxu0 %v3297_v47 }
 0x2bc   :  { %v3418_v6 = vpop.eup %3417  ;;  %3302 = vmatprep.subr.bf16.mxu0 %v3301_v52 }
 0x2bd   :  { %v3420_v7 = vpop.eup %3419 }
 0x2be   :  { %v3422_v8 = vpop.eup %3421  ;;  %v959_v9 = vadd.f32 %v3420_v7, %v3418_v6 }
 0x2bf   :  { %v3424_v10 = vpop.eup %3423  ;;  %3304 = vmatpush3.bf16.msra.mxu0 %v3301_v52 }
 0x2c0   :  { %v3426_v11 = vpop.eup %3425  ;;  %v961_v12 = vadd.f32 %v3422_v8, %v959_v9  ;;  %v1475_v9 = vld [vmem:[%s4355_s2 + $0x14] sm:$0x1]  ;;  %3322 = vmatprep.subr.bf16.mxu0 %v4033_v2 }
 0x2c1   :  { %v3428_v13 = vpop.eup %3427 }
 0x2c2   :  { %v963_v14 = vadd.f32 %v3424_v10, %v961_v12  ;;  %v958_v15 = vadd.f32 %v3428_v13, %v3426_v11  ;;  %v3430_v16 = vpop.eup %3429  ;;  %v1477_v12 = vld [vmem:[%s4355_s2 + $0x1c] sm:$0x1] }
 0x2c3   :  { %v3432_v18 = vpop.eup %3431 }
 0x2c4   :  { %3433 = vrcp.f32 %v963_v14  ;;  %v960_v17 = vadd.f32 %v3430_v16, %v958_v15  ;;  %v1536_v14 = vrot.slane %v1472_v3, 6  ;;  %v1538_v15 = vrot.slane %v1473_v4, 5  ;;  %v1053_v3 = vpop.permute.xlu0 %1052 }
 0x2c6   :  { %v962_v24 = vadd.f32 %v3432_v18, %v960_v17  ;;  %v1542_v17 = vrot.slane %v1475_v9, 3 }
 0x2c8   :  { %3435 = vrcp.f32 %v962_v24 }
 0x2ce   :  { %v3434_v25 = vpop.eup %3433 }
 0x2cf   :  { %v967_v26 = vmul.f32 %v3434_v25, %v3418_v6  ;;  %v1063_v27 = vmul.f32 %v3434_v25, %v3420_v7  ;;  %v1158_v28 = vmul.f32 %v3434_v25, %v3422_v8  ;;  %v1253_v29 = vmul.f32 %v3434_v25, %v3424_v10  ;;  %v1474_v6 = vld [vmem:[%s4355_s2 + $0x10] sm:$0x1]  ;;  %v1470_v8 = vld [vmem:[%s4355_s2] sm:$0x1]  ;;  %v1476_v10 = vld [vmem:[%s4355_s2 + $0x18] sm:$0x1] }
 0x2d0   :  { %v3313_v7 = vpack.c.bf16 %v1467_v61, %v1466_v60  ;;  %v1480_v25 = vld [vmem:[%s4355_s2 + $0x28] sm:$0x1] }
 0x2d1   :  { %v1550_v40 = vrot.slane %v1480_v25, 6 }
 0x2d2   :  { %v3436_v30 = vpop.eup %3435 }
 0x2d3   :  { %v966_v31 = vmul.f32 %v3436_v30, %v3426_v11  ;;  %v1062_v32 = vmul.f32 %v3436_v30, %v3428_v13  ;;  %v1157_v33 = vmul.f32 %v3436_v30, %v3430_v16  ;;  %v1252_v37 = vmul.f32 %v3436_v30, %v3432_v18  ;;  %v1469_v11 = vld [vmem:[%s4365_s12 + $0x38] sm:$0xff]  ;;  %v1479_v18 = vld [vmem:[%s4355_s2 + $0x24] sm:$0x1] }
 0x2d4   :  { %v1534_v13 = vrot.slane %v1471_v0, 7  ;;  %v1540_v16 = vrot.slane %v1474_v6, 4  ;;  %v1544_v30 = vrot.slane %v1476_v10, 2  ;;  %v1548_v39 = vrot.slane %v1479_v18, 7  ;;  %v1148_v0 = vpop.permute.xlu1 %1147 }
 0x2d5   :  { %2997 = vmatprep.mubr.msk.f32.mxu1 %vm968_vm8, %v966_v31  ;;  %v1546_v31 = vrot.slane %v1477_v12, 1 }
 0x2d6   :  { %2998 = vmatmul.mubr.msk.f32.vlgmr.msra.gmra.mrb[12].mxu1 %vm968_vm8, %v967_v26  ;;  %v1535_v24 = vsel %vm242_vm1, %v1534_v13, %v1470_v8  ;;  %v1481_v26 = vld [vmem:[%s4355_s2 + $0x2c] sm:$0x1]  ;;  %v1243_v13 = vpop.permute.xlu0 %1242 }
 0x2d7   :  { %3001 = vmatpush3.msra.mxu1 %v3937_v19  ;;  %3002 = vmatprep.mubr.msk.f32.mxu1 %vm968_vm8, %v1062_v32  ;;  %v1478_v32 = vld [vmem:[%s4355_s2 + $0x20] sm:$0x1]  ;;  %v1552_v41 = vrot.slane %v1481_v26, 5 }
 0x2d8   :  { %3005 = vmatprep.subr.mxu1 %v3937_v19  ;;  %v1549_v47 = vsel %vm242_vm1, %v1548_v39, %v1478_v32  ;;  %v1245_v10 = vpop.permute.xlu1 %1244 }
 0x2d9   :  { %v1551_v52 = vsel %vm245_vm2, %v1550_v40, %v1549_v47 }
 0x2da   :  { %3003 = vmatmul.mubr.msk.f32.vlgmr.msra.gmra.mrb[14].mxu1 %vm968_vm8, %v1063_v27  ;;  %v1482_v27 = vld [vmem:[%s4355_s2 + $0x30] sm:$0x1]  ;;  %v1553_v55 = vsel %vm248_vm3, %v1552_v41, %v1551_v52  ;;  %v1487_v41 = vld [vmem:[%s4355_s2 + $0x5] sm:$0x1] }
 0x2db   :  { %3006 = vmatpush3.msra.mxu1 %v3937_v19  ;;  %3007 = vmatprep.mubr.msk.f32.mxu1 %vm968_vm8, %v1157_v33  ;;  %v1483_v33 = vld [vmem:[%s4355_s2 + $0x34] sm:$0x1]  ;;  %v1554_v45 = vrot.slane %v1482_v27, 4 }
 0x2dc   :  { %3010 = vmatprep.subr.mxu1 %v3937_v19  ;;  %v1556_v49 = vrot.slane %v1483_v33, 3  ;;  %v1340_v26 = vpop.permute.xlu1 %1339  ;;  %v1456_v33 = vld [vmem:[%s4364_s11 + $0x10] sm:$0xff] }
 0x2dd   :  { %v1555_v58 = vsel %vm251_vm4, %v1554_v45, %v1553_v55  ;;  %v1495_v45 = vld [vmem:[%s4355_s2 + $0x25] sm:$0x1]  ;;  %v1491_v55 = vld [vmem:[%s4355_s2 + $0x15] sm:$0x1] }
 0x2de   :  { %3008 = vmatmul.mubr.msk.f32.vlgmr.msra.gmra.mrb[16].mxu1 %vm968_vm8, %v1158_v28  ;;  %v3317_v28 = vpack.c.bf16 %v1469_v11, %v1468_v1 }
 0x2df   :  { %3011 = vmatpush3.msra.mxu1 %v3937_v19  ;;  %3012 = vmatprep.mubr.msk.f32.mxu1 %vm968_vm8, %v1252_v37 }
 0x2e0   :  { %3306 = vmatprep.subr.bf16.mxu1 %v3305_v57 }
 0x2e2   :  { %3013 = vmatmul.mubr.msk.f32.vlgmr.msra.gmra.mrb[18].mxu1 %vm968_vm8, %v1253_v29  ;;  %v1537_v29 = vsel %vm245_vm2, %v1536_v14, %v1535_v24 }
 0x2e3   :  { %3308 = vmatpush3.bf16.msra.mxu1 %v3305_v57  ;;  %v1539_v37 = vsel %vm248_vm3, %v1538_v15, %v1537_v29  ;;  %v1560_v57 = vrot.slane %v1485_v44, 1  ;;  %v1338_v29 = vpop.permute.xlu0 %1337  ;;  %v1578_v44 = vrot.slane %v1487_v41, 7  ;;  %v1502_v41 = vld [vmem:[%s4355_s2 + $0x2] sm:$0x1] }
 0x2e4   :  { %3310 = vmatprep.subr.bf16.mxu1 %v3309_v59  ;;  %v1541_v43 = vsel %vm251_vm4, %v1540_v16, %v1539_v37  ;;  %v1457_v37 = vld [vmem:[%s4364_s11 + $0x18] sm:$0xff] }
 0x2e5   :  { %v1543_v46 = vsel %vm254_vm5, %v1542_v17, %v1541_v43  ;;  %v3325_v40 = vpack.c.bf16 %v1457_v37, %v1456_v33  ;;  %v1488_v43 = vld [vmem:[%s4355_s2 + $0x9] sm:$0x1]  ;;  %v1504_v33 = vld [vmem:[%s4355_s2 + $0xa] sm:$0x1]  ;;  %v1505_v37 = vld [vmem:[%s4355_s2 + $0xe] sm:$0x1] }
 0x2e6   :  { %v1545_v50 = vsel %vm257_vm6, %v1544_v30, %v1543_v46  ;;  %v1486_v46 = vld [vmem:[%s4355_s2 + $0x1] sm:$0x1]  ;;  %v1580_v47 = vrot.slane %v1488_v43, 6  ;;  %v1506_v43 = vld [vmem:[%s4355_s2 + $0x12] sm:$0x1] }
 0x2e7   :  { %3312 = vmatpush3.bf16.msra.mxu1 %v3309_v59  ;;  %v1547_v54 = vsel %vm260_vm7, %v1546_v31, %v1545_v50  ;;  %v1557_v59 = vsel %vm254_vm5, %v1556_v49, %v1555_v58  ;;  %v1592_v49 = vrot.slane %v1495_v45, 7  ;;  %v1490_v50 = vld [vmem:[%s4355_s2 + $0x11] sm:$0x1]  ;;  %v1579_v52 = vsel %vm242_vm1, %v1578_v44, %v1486_v46  ;;  %v1507_v44 = vld [vmem:[%s4355_s2 + $0x16] sm:$0x1] }
 0x2e8   :  { %3314 = vmatprep.subr.bf16.mxu1 %v3313_v7  ;;  %3050 = vmatprep.mubr.msk.f32.mxu1 %vm79_vm0, %v1547_v54  ;;  %v1559_v60 = vsel %vm257_vm6, %v1558_v53, %v1557_v59  ;;  %v1494_v54 = vld [vmem:[%s4355_s2 + $0x21] sm:$0x1]  ;;  %v1584_v58 = vrot.slane %v1490_v50, 4  ;;  %v1496_v59 = vld [vmem:[%s4355_s2 + $0x29] sm:$0x1]  ;;  %v1626_v50 = vrot.slane %v1505_v37, 5 }
 0x2e9   :  { %v1561_v61 = vsel %vm260_vm7, %v1560_v57, %v1559_v60  ;;  %v1581_v57 = vsel %vm245_vm2, %v1580_v47, %v1579_v52  ;;  %v1593_v60 = vsel %vm242_vm1, %v1592_v49, %v1494_v54  ;;  %v1508_v46 = vld [vmem:[%s4355_s2 + $0x1a] sm:$0x1]  ;;  %v1624_v47 = vrot.slane %v1504_v33, 6  ;;  %v1509_v49 = vld [vmem:[%s4355_s2 + $0x1e] sm:$0x1] }
 0x2ea   :  { %v1628_v52 = vrot.slane %v1506_v43, 4  ;;  %v1632_v54 = vrot.slane %v1508_v46, 2  ;;  %v2647_v37 = vld [vmem:[%s4362_s9] ss:$0 sm:$0xff]  ;;  %s3486_s9 = smov [#allocation2]  }
 0x2eb   :  { %3316 = vmatpush3.bf16.msra.mxu1 %v3313_v7  ;;  %v2650_v46 = vld [vmem:[%s4363_s10] ss:$0 sm:$0xff]  ;;  %s2607_s10 = sshll.u32 %s3486_s9, 4  ;;  %s2608_s10 = int_to_ptr.vmem [resolvable:$true] %s2607_s10 }
 0x2ec   :  { %3318 = vmatprep.subr.bf16.mxu1 %v3317_v28  ;;  %p3462_p1 = scmp.lt.s32.totalorder %s2608_s10, %s2608_s10 }
 0x2ef   :  { %3320 = vmatpush3.bf16.msra.mxu1 %v3317_v28 }
 0x2f0   :  { %3338 = vmatprep.subr.bf16.mxu1 %v3853_v48 }
 0x2f2   :  { %3051 = vmatmul.mubr.msk.f32.vlgmr.msra.gmra.mrb[20].mxu1 %vm79_vm0, %v1561_v61  ;;  %v1492_v61 = vld [vmem:[%s4355_s2 + $0x19] sm:$0x1] }
 0x2f3   :  { %3340 = vmatpush3.bf16.msra.mxu1 %v3853_v48 }
 0x2f4   :  { %3342 = vmatprep.subr.bf16.mxu1 %v3861_v51 }
 0x2f7   :  { %3344 = vmatpush3.bf16.msra.mxu1 %v3861_v51 }
 0x2f8   :  { %3346 = vmatprep.subr.bf16.mxu1 %v3874_v56 }
 0x2fb   :  { %3348 = vmatpush3.bf16.msra.mxu1 %v3874_v56 }
 0x2fc   :  { %3350 = vmatprep.subr.bf16.mxu1 %v3900_v5 }
 0x2ff   :  { %3352 = vmatpush3.bf16.msra.mxu1 %v3900_v5 }
 0x300   :  { %3370 = vmatprep.subr.bf16.mxu1 %v3853_v48 }
 0x3a9   :  { %v2999_v1 = vpop.f32.mrb[12].mxu1 }
 0x3aa   :  { %v1041_v4 = vpop.f32.mrb[13].mxu1  ;;  %v1059_v7 = vmul.f32 %v2999_v1, %v1055_v63  ;;  %v1586_v63 = vrot.slane %v1491_v55, 3  ;;  %v1594_v1 = vrot.slane %v1496_v59, 6  ;;  %v1512_v59 = vld [vmem:[%s4355_s2 + $0x2a] sm:$0x1] }
 0x3ab   :  { %v1058_v11 = vmul.f32 %v1053_v3, %v1041_v4  ;;  %v1493_v3 = vld [vmem:[%s4355_s2 + $0x1d] sm:$0x1] }
 0x3ad   :  { %v3004_v6 = vpop.f32.mrb[14].mxu1 }
 0x3ae   :  { %v1154_v8 = vmul.f32 %v3004_v6, %v1150_v62  ;;  %v1136_v9 = vpop.f32.mrb[15].mxu1  ;;  %v1588_v6 = vrot.slane %v1492_v61, 2  ;;  %v1513_v61 = vld [vmem:[%s4355_s2 + $0x2e] sm:$0x1] }
 0x3af   :  { %v1153_v12 = vmul.f32 %v1148_v0, %v1136_v9  ;;  %v1497_v0 = vld [vmem:[%s4355_s2 + $0x2d] sm:$0x1] }
 0x3b0   :  { %v1156_v14 = vadd.f32 %v1154_v8, %v1059_v7  ;;  %v1498_v7 = vld [vmem:[%s4355_s2 + $0x31] sm:$0x1]  ;;  %v1596_v8 = vrot.slane %v1497_v0, 5 }
 0x3b1   :  { %v1155_v15 = vadd.f32 %v1153_v12, %v1058_v11  ;;  %v3009_v16 = vpop.f32.mrb[16].mxu1  ;;  %v1499_v11 = vld [vmem:[%s4355_s2 + $0x35] sm:$0x1]  ;;  %v1500_v12 = vld [vmem:[%s4355_s2 + $0x39] sm:$0x1] }
 0x3b2   :  { %v1249_v17 = vmul.f32 %v3009_v16, %v1245_v10  ;;  %v1231_v18 = vpop.f32.mrb[17].mxu1  ;;  %v1590_v10 = vrot.slane %v1493_v3, 1  ;;  %v1501_v16 = vld [vmem:[%s4355_s2 + $0x3d] sm:$0x1]  ;;  %v1516_v3 = vld [vmem:[%s4355_s2 + $0x3a] sm:$0x1] }
 0x3b3   :  { %v1248_v24 = vmul.f32 %v1243_v13, %v1231_v18  ;;  %v1595_v13 = vsel %vm245_vm2, %v1594_v1, %v1593_v60  ;;  %v1600_v18 = vrot.slane %v1499_v11, 3  ;;  %v1634_v1 = vrot.slane %v1509_v49, 1 }
 0x3b4   :  { %v1251_v25 = vadd.f32 %v1249_v17, %v1156_v14  ;;  %v1598_v14 = vrot.slane %v1498_v7, 4  ;;  %v1597_v17 = vsel %vm248_vm3, %v1596_v8, %v1595_v13  ;;  %v1460_v7 = vld [vmem:[%s4364_s11 + $0x30] sm:$0xff] }
 0x3b5   :  { %v1250_v27 = vadd.f32 %v1248_v24, %v1155_v15  ;;  %v3014_v28 = vpop.f32.mrb[18].mxu1  ;;  %v1602_v24 = vrot.slane %v1500_v12, 2  ;;  %v1461_v12 = vld [vmem:[%s4364_s11 + $0x38] sm:$0xff] }
 0x3b6   :  { %v1344_v30 = vmul.f32 %v3014_v28, %v1340_v26  ;;  %v1326_v31 = vpop.f32.mrb[19].mxu1  ;;  %v1599_v26 = vsel %vm251_vm4, %v1598_v14, %v1597_v17  ;;  %v1458_v28 = vld [vmem:[%s4364_s11 + $0x20] sm:$0xff] }
 0x3b7   :  { %v1343_v32 = vmul.f32 %v1338_v29, %v1326_v31  ;;  %v1459_v29 = vld [vmem:[%s4364_s11 + $0x28] sm:$0xff] }
 0x3b8   :  { %v4115_v38 = vadd.f32 %v1344_v30, %v1251_v25  ;;  %v1601_v30 = vsel %vm254_vm5, %v1600_v18, %v1599_v26  ;;  %v3329_v31 = vpack.c.bf16 %v1459_v29, %v1458_v28  ;;  %v1646_v18 = vrot.slane %v1516_v3, 2 }
 0x3b9   :  { %v4117_v39 = vadd.f32 %v1343_v32, %v1250_v27  ;;  %v1604_v27 = vrot.slane %v1501_v16, 1  ;;  %v1503_v32 = vld [vmem:[%s4355_s2 + $0x6] sm:$0x1] }
 0x3bb   :  { %3031 = vmatprep.mubr.msk.f32.mxu0 %vm79_vm0, %v4117_v39 }
 0x3bc   :  { %3032 = vmatmul.mubr.msk.f32.vlgmr.msra.gmra.mrb[8].mxu0 %vm79_vm0, %v4115_v38 }
 0x3bd   :  { %3324 = vmatpush3.bf16.msra.mxu0 %v4033_v2  ;;  %v1489_v2 = vld [vmem:[%s4355_s2 + $0xd] sm:$0x1] }
 0x3be   :  { %3326 = vmatprep.subr.bf16.mxu0 %v3325_v40  ;;  %v1582_v53 = vrot.slane %v1489_v2, 5  ;;  %v1622_v2 = vrot.slane %v1503_v32, 7 }
 0x3c0   :  { %v1583_v62 = vsel %vm248_vm3, %v1582_v53, %v1581_v57  ;;  %v1630_v53 = vrot.slane %v1507_v44, 3  ;;  %v1623_v55 = vsel %vm242_vm1, %v1622_v2, %v1502_v41  ;;  %v1510_v57 = vld [vmem:[%s4355_s2 + $0x22] sm:$0x1] }
 0x3c1   :  { %3328 = vmatpush3.bf16.msra.mxu0 %v3325_v40  ;;  %v1585_v4 = vsel %vm251_vm4, %v1584_v58, %v1583_v62  ;;  %v1603_v40 = vsel %vm257_vm6, %v1602_v24, %v1601_v30  ;;  %v1511_v58 = vld [vmem:[%s4355_s2 + $0x26] sm:$0x1]  ;;  %v1625_v60 = vsel %vm245_vm2, %v1624_v47, %v1623_v55  ;;  %v1514_v62 = vld [vmem:[%s4355_s2 + $0x32] sm:$0x1]  ;;  %v3333_v24 = vpack.c.bf16 %v1461_v12, %v1460_v7 }
 0x3c2   :  { %v1587_v9 = vsel %vm254_vm5, %v1586_v63, %v1585_v4  ;;  %v1605_v45 = vsel %vm260_vm7, %v1604_v27, %v1603_v40  ;;  %3330 = vmatprep.subr.bf16.mxu0 %v3329_v31  ;;  %v1515_v63 = vld [vmem:[%s4355_s2 + $0x36] sm:$0x1]  ;;  %v1627_v0 = vsel %vm248_vm3, %v1626_v50, %v1625_v60  ;;  %v1636_v4 = vrot.slane %v1511_v58, 7 }
 0x3c3   :  { %v1589_v15 = vsel %vm257_vm6, %v1588_v6, %v1587_v9  ;;  %v1638_v6 = vrot.slane %v1512_v59, 6  ;;  %v1629_v8 = vsel %vm251_vm4, %v1628_v52, %v1627_v0  ;;  %v1517_v9 = vld [vmem:[%s4355_s2 + $0x3e] sm:$0x1]  ;;  %v1642_v11 = vrot.slane %v1514_v62, 4 }
 0x3c4   :  { %v1591_v25 = vsel %vm260_vm7, %v1590_v10, %v1589_v15  ;;  %v1640_v10 = vrot.slane %v1513_v61, 5  ;;  %v1631_v13 = vsel %vm254_vm5, %v1630_v53, %v1629_v8  ;;  %v1637_v14 = vsel %vm242_vm1, %v1636_v4, %v1510_v57 }
 0x3c5   :  { %3053 = vmatprep.mubr.msk.f32.mxu1 %vm79_vm0, %v1591_v25  ;;  %3332 = vmatpush3.bf16.msra.mxu0 %v3329_v31  ;;  %v1644_v15 = vrot.slane %v1515_v63, 3  ;;  %v1633_v16 = vsel %vm257_vm6, %v1632_v54, %v1631_v13  ;;  %v1639_v17 = vsel %vm245_vm2, %v1638_v6, %v1637_v14  ;;  %v1648_v27 = vrot.slane %v1517_v9, 1  ;;  %v3052_v32 = vpop.f32.mrb[20].mxu1 }
 0x3c6   :  { %3054 = vmatmul.mubr.msk.f32.gmra.mrb[22].mxu1 %vm79_vm0, %v1605_v45  ;;  %v1635_v25 = vsel %vm260_vm7, %v1634_v1, %v1633_v16  ;;  %v1641_v26 = vsel %vm248_vm3, %v1640_v10, %v1639_v17  ;;  %3334 = vmatprep.subr.bf16.mxu0 %v3333_v24  ;;  %v1734_v33 = vpop.f32.mrb[21].mxu1 }
 0x3c7   :  { %3056 = vmatprep.mubr.msk.f32.mxu1 %vm79_vm0, %v1635_v25  ;;  %v1643_v28 = vsel %vm251_vm4, %v1642_v11, %v1641_v26  ;;  %2305 = vrot.lane.b32.xlu1 %v3052_v32, %s3485_s26 }
 0x3c8   :  { %v1645_v29 = vsel %vm254_vm5, %v1644_v15, %v1643_v28  ;;  %2303 = vrot.lane.b32.xlu0 %v1734_v33, %s3485_s26 }
 0x3c9   :  { %3336 = vmatpush3.bf16.msra.mxu0 %v3333_v24  ;;  %v1647_v30 = vsel %vm257_vm6, %v1646_v18, %v1645_v29 }
 0x3ca   :  { %3354 = vmatprep.subr.bf16.mxu0 %v3853_v48  ;;  %v1649_v31 = vsel %vm260_vm7, %v1648_v27, %v1647_v30 }
 0x3cb   :  { %3057 = vmatmul.mubr.msk.f32.gmra.mrb[24].mxu1 %vm79_vm0, %v1649_v31 }
 0x48f   :  { %v3033_v40 = vpop.f32.mrb[8].mxu0 }
 0x490   :  { %v1440_v41 = vadd.f32 %v3033_v40, %v2647_v37  ;;  %v1434_v43 = vpop.f32.mrb[9].mxu0 }
 0x491   :  { %v1435_v44 = vadd.f32 %v2647_v37, %v1434_v43 }
 0x492   :  { %v1444_v45 = vmax.f32 %v1440_v41, 0.0 }
 0x493   :  { %v1443_v2 = vmax.f32 %v1435_v44, 0.0 }
 0x494   :  { %v1453_v49 = vadd.f32 %v2650_v46, %v1444_v45 }
 0x495   :  { %v1452_v47 = vadd.f32 %v2650_v46, %v1443_v2 }
 0x497   :  { %3059 = vmatprep.mubr.msk.f32.mxu1 %vm79_vm0, %v1452_v47  ;;  %3078 = vmatprep.mubr.msk.f32.mxu0 %vm79_vm0, %v1452_v47 }
 0x498   :  { %3060 = vmatmul.mubr.msk.f32.gmra.mrb[26].mxu1 %vm79_vm0, %v1453_v49  ;;  %3079 = vmatmul.mubr.msk.f32.vlgmr.msra.gmra.mrb[10].mxu0 %vm79_vm0, %v1453_v49 }
 0x499   :  { %3356 = vmatpush3.bf16.msra.mxu0 %v3853_v48  ;;  %v3055_v50 = vpop.f32.mrb[22].mxu1 }
 0x49a   :  { %3358 = vmatprep.subr.bf16.mxu0 %v3861_v51  ;;  %2400 = vrot.lane.b32.xlu1 %v3055_v50, %s3485_s26  ;;  %v1744_v52 = vpop.f32.mrb[23].mxu1 }
 0x49b   :  { %2398 = vrot.lane.b32.xlu0 %v1744_v52, %s3485_s26 }
 0x49d   :  { %3360 = vmatpush3.bf16.msra.mxu0 %v3861_v51 }
 0x49e   :  { %3362 = vmatprep.subr.bf16.mxu0 %v3874_v56  ;;  %v3058_v53 = vpop.f32.mrb[24].mxu1 }
 0x49f   :  { %2495 = vrot.lane.b32.xlu1 %v3058_v53, %s3485_s26  ;;  %v1754_v54 = vpop.f32.mrb[25].mxu1 }
 0x4a0   :  { %2493 = vrot.lane.b32.xlu0 %v1754_v54, %s3485_s26 }
 0x4a1   :  { %3364 = vmatpush3.bf16.msra.mxu0 %v3874_v56 }
 0x4a2   :  { %3366 = vmatprep.subr.bf16.mxu0 %v3900_v5 }
 0x4a5   :  { %3368 = vmatpush3.bf16.msra.mxu0 %v3900_v5 }
 0x4a6   :  { %3386 = vmatprep.subr.bf16.mxu0 %v3853_v48 }
 0x56b   :  { %v3061_v55 = vpop.f32.mrb[26].mxu1  ;;  %v3080_v57 = vpop.f32.mrb[10].mxu0 }
 0x56c   :  { %v1849_v58 = vmul.f32 %v3080_v57, %v3052_v32  ;;  %v1932_v59 = vmul.f32 %v3080_v57, %v3055_v50  ;;  %v2015_v60 = vmul.f32 %v3080_v57, %v3058_v53  ;;  %v2098_v61 = vmul.f32 %v3080_v57, %v3061_v55  ;;  %v1839_v62 = vpop.f32.mrb[11].mxu0  ;;  %2590 = vrot.lane.b32.xlu1 %v3061_v55, %s3485_s26  ;;  %v1764_v63 = vpop.f32.mrb[27].mxu1 }
 0x56d   :  { %v1848_v0 = vmul.f32 %v1839_v62, %v1734_v33  ;;  %v1931_v1 = vmul.f32 %v1839_v62, %v1744_v52  ;;  %v2014_v3 = vmul.f32 %v1839_v62, %v1754_v54  ;;  %v2097_v4 = vmul.f32 %v1839_v62, %v1764_v63  ;;  %2588 = vrot.lane.b32.xlu0 %v1764_v63, %s3485_s26  ;;  %s3457_s26 = scalar_lea.vmem %s2608_s10, 256 }
 0x56e   :  { %p3458_p0 = scmp.ne.s32.totalorder %s2608_s10, %s3457_s26  ;;  %p3463_p2 = scmp.lt.s32.totalorder %s3457_s26, %s3457_s26 }
 0x56f   :  { %3097 = vmatprep.mubr.msk.f32.mxu1 %vm79_vm0, %v1848_v0  ;;  %3116 = vmatprep.mubr.msk.f32.mxu0 %vm79_vm0, %v1931_v1 }
 0x570   :  { %3098 = vmatmul.mubr.msk.f32.vlgmr.msra.gmra.mrb[28].mxu1 %vm79_vm0, %v1849_v58  ;;  %3117 = vmatmul.mubr.msk.f32.vlgmr.msra.gmra.mrb[12].mxu0 %vm79_vm0, %v1932_v59  ;;  %p3464_p3 = por %p3463_p2, %p3462_p1 }
 0x571   :  { %3372 = vmatpush3.bf16.msra.mxu1 %v3853_v48  ;;  %3388 = vmatpush3.bf16.msra.mxu0 %v3853_v48 }
 0x572   :  { %3135 = vmatprep.mubr.msk.f32.mxu1 %vm79_vm0, %v2014_v3  ;;  %3154 = vmatprep.mubr.msk.f32.mxu0 %vm79_vm0, %v2097_v4  ;;  %p3465_p4 = pnand %p3464_p3, %p3458_p0 }
 0x573   :  { %3374 = vmatprep.subr.bf16.mxu1 %v3861_v51  ;;  %3390 = vmatprep.subr.bf16.mxu0 %v3861_v51 }
 0x575   :  { %3376 = vmatpush3.bf16.msra.mxu1 %v3861_v51  ;;  %3392 = vmatpush3.bf16.msra.mxu0 %v3861_v51 }
 0x576   :  { %3378 = vmatprep.subr.bf16.mxu1 %v3874_v56  ;;  %3394 = vmatprep.subr.bf16.mxu0 %v3874_v56 }
 0x579   :  { %3380 = vmatpush3.bf16.msra.mxu1 %v3874_v56  ;;  %3396 = vmatpush3.bf16.msra.mxu0 %v3874_v56 }
 0x57a   :  { %3382 = vmatprep.subr.bf16.mxu1 %v3900_v5  ;;  %3398 = vmatprep.subr.bf16.mxu0 %v3900_v5 }
 0x57d   :  { %3384 = vmatpush3.bf16.msra.mxu1 %v3900_v5  ;;  %3400 = vmatpush3.bf16.msra.mxu0 %v3900_v5 }
 0x57e   :  { %3157 = vmatprep.subr.mxu1 %v3937_v19 }
 0x580   :  { %3136 = vmatmul.mubr.msk.f32.vlgmr.msra.gmra.mrb[30].mxu1 %vm79_vm0, %v2015_v60  ;;  %3155 = vmatmul.mubr.msk.f32.vlgmr.msra.gmra.mrb[14].mxu0 %vm79_vm0, %v2098_v61 }
 0x581   :  { %3158 = vmatpush3.msra.mxu1 %v3937_v19 }
 0x582   :  { %3162 = vmatprep.subr.mxu1 %v3937_v19 }
 0x643   :  { %v3099_v48 = vpop.f32.mrb[28].mxu1  ;;  %v3118_v51 = vpop.f32.mrb[12].mxu0 }
 0x644   :  { %v1928_v56 = vadd.f32 %v3099_v48, %v3942_v20  ;;  %v2011_v6 = vadd.f32 %v3118_v51, %v3946_v22  ;;  %v1922_v7 = vpop.f32.mrb[29].mxu1  ;;  %v2005_v8 = vpop.f32.mrb[13].mxu0 }
 0x645   :  { %v1923_v5 = vadd.f32 %v1922_v7, %v3944_v21  ;;  %v2006_v9 = vadd.f32 %v2005_v8, %v3948_v23  ;;  %v2306_v51 = vpop.permute.xlu1 %2305 }
 0x646   :  { %v2181_v10 = vmax.f32 %v1928_v56, %v2011_v6 }
 0x647   :  { %v2180_v11 = vmax.f32 %v1923_v5, %v2006_v9 }
 0x653   :  { %v3137_v12 = vpop.f32.mrb[30].mxu1  ;;  %v3156_v13 = vpop.f32.mrb[14].mxu0 }
 0x654   :  { %v2094_v14 = vadd.f32 %v3137_v12, %v3958_v36  ;;  %v2088_v15 = vpop.f32.mrb[31].mxu1  ;;  %v2171_v16 = vpop.f32.mrb[15].mxu0  ;;  %v2177_v20 = vadd.f32 %v3156_v13, %v3961_v42 }
 0x655   :  { %v2089_v17 = vadd.f32 %v2088_v15, %v3954_v34  ;;  %v2172_v24 = vadd.f32 %v2171_v16, %v3956_v35 }
 0x656   :  { %v2183_v18 = vmax.f32 %v2181_v10, %v2094_v14 }
 0x657   :  { %v2182_v22 = vmax.f32 %v2180_v11, %v2089_v17 }
 0x658   :  { %v2185_v25 = vmax.f32 %v2183_v18, %v2177_v20 }
 0x659   :  { %v2184_v21 = vmax.f32 %v2182_v22, %v2172_v24 }
 0x65a   :  { %v2187_v26 = vsub.f32 %v1928_v56, %v2185_v25  ;;  %v2193_v23 = vsub.f32 %v2011_v6, %v2185_v25  ;;  %v2199_v27 = vsub.f32 %v2094_v14, %v2185_v25  ;;  %v2205_v28 = vsub.f32 %v2177_v20, %v2185_v25  ;;  %v2304_v56 = vpop.permute.xlu0 %2303  ;;  %v2401_v6 = vpop.permute.xlu1 %2400 }
 0x65b   :  { %v2186_v29 = vsub.f32 %v1923_v5, %v2184_v21  ;;  %v2192_v30 = vsub.f32 %v2006_v9, %v2184_v21  ;;  %v2198_v31 = vsub.f32 %v2089_v17, %v2184_v21  ;;  %v2204_v36 = vsub.f32 %v2172_v24, %v2184_v21 }
 0x65c   :  { %v2190_v32 = vmul.f32 1.442695, %v2187_v26  ;;  %v2196_v33 = vmul.f32 1.442695, %v2193_v23  ;;  %v2202_v37 = vmul.f32 1.442695, %v2199_v27 }
 0x65d   :  { %v2208_v34 = vmul.f32 1.442695, %v2205_v28  ;;  %v2188_v40 = vmul.f32 1.442695, %v2186_v29  ;;  %v2194_v42 = vmul.f32 1.442695, %v2192_v30 }
 0x65e   :  { %3437 = vpow2.f32 %v2190_v32  ;;  %v2200_v35 = vmul.f32 1.442695, %v2198_v31  ;;  %v2206_v41 = vmul.f32 1.442695, %v2204_v36  ;;  %v2399_v8 = vpop.permute.xlu0 %2398  ;;  %v2496_v13 = vpop.permute.xlu1 %2495 }
 0x65f   :  { %3439 = vpow2.f32 %v2196_v33 }
 0x660   :  { %3441 = vpow2.f32 %v2202_v37 }
 0x661   :  { %3443 = vpow2.f32 %v2208_v34 }
 0x662   :  { %3445 = vpow2.f32 %v2188_v40  ;;  %v2494_v16 = vpop.permute.xlu0 %2493  ;;  %v2591_v21 = vpop.permute.xlu1 %2590 }
 0x663   :  { %3447 = vpow2.f32 %v2194_v42 }
 0x664   :  { %3449 = vpow2.f32 %v2200_v35 }
 0x665   :  { %3451 = vpow2.f32 %v2206_v41 }
 0x666   :  { %v2589_v27 = vpop.permute.xlu0 %2588 }
 0x668   :  { %v3438_v43 = vpop.eup %3437 }
 0x669   :  { %v3440_v44 = vpop.eup %3439 }
 0x66a   :  { %v3442_v45 = vpop.eup %3441  ;;  %v2211_v46 = vadd.f32 %v3440_v44, %v3438_v43 }
 0x66b   :  { %v3444_v2 = vpop.eup %3443 }
 0x66c   :  { %v3446_v47 = vpop.eup %3445  ;;  %v2213_v49 = vadd.f32 %v3442_v45, %v2211_v46 }
 0x66d   :  { %v3448_v50 = vpop.eup %3447 }
 0x66e   :  { %v2215_v52 = vadd.f32 %v3444_v2, %v2213_v49  ;;  %v2210_v53 = vadd.f32 %v3448_v50, %v3446_v47  ;;  %v3450_v54 = vpop.eup %3449 }
 0x66f   :  { %v3452_v57 = vpop.eup %3451 }
 0x670   :  { %3453 = vrcp.f32 %v2215_v52  ;;  %v2212_v55 = vadd.f32 %v3450_v54, %v2210_v53 }
 0x672   :  { %v2214_v58 = vadd.f32 %v3452_v57, %v2212_v55 }
 0x674   :  { %3455 = vrcp.f32 %v2214_v58 }
 0x67a   :  { %v3454_v59 = vpop.eup %3453 }
 0x67b   :  { %v2219_v60 = vmul.f32 %v3454_v59, %v3438_v43  ;;  %v2314_v61 = vmul.f32 %v3454_v59, %v3440_v44  ;;  %v2409_v62 = vmul.f32 %v3454_v59, %v3442_v45  ;;  %v2504_v63 = vmul.f32 %v3454_v59, %v3444_v2 }
 0x67e   :  { %v3456_v0 = vpop.eup %3455 }
 0x67f   :  { %v2218_v1 = vmul.f32 %v3456_v0, %v3446_v47  ;;  %v2313_v3 = vmul.f32 %v3456_v0, %v3448_v50  ;;  %v2408_v4 = vmul.f32 %v3456_v0, %v3450_v54  ;;  %v2503_v48 = vmul.f32 %v3456_v0, %v3452_v57 }
 0x681   :  { %3159 = vmatprep.mubr.msk.f32.mxu1 %vm968_vm8, %v2218_v1 }
 0x682   :  { %3160 = vmatmul.mubr.msk.f32.vlgmr.msra.gmra.mrb[32].mxu1 %vm968_vm8, %v2219_v60 }
 0x683   :  { %3163 = vmatpush3.msra.mxu1 %v3937_v19  ;;  %3164 = vmatprep.mubr.msk.f32.mxu1 %vm968_vm8, %v2313_v3 }
 0x684   :  { %3167 = vmatprep.subr.mxu1 %v3937_v19 }
 0x686   :  { %3165 = vmatmul.mubr.msk.f32.vlgmr.msra.gmra.mrb[34].mxu1 %vm968_vm8, %v2314_v61 }
 0x687   :  { %3168 = vmatpush3.msra.mxu1 %v3937_v19  ;;  %3169 = vmatprep.mubr.msk.f32.mxu1 %vm968_vm8, %v2408_v4 }
 0x688   :  { %3172 = vmatprep.subr.mxu1 %v3937_v19 }
 0x68a   :  { %3170 = vmatmul.mubr.msk.f32.vlgmr.msra.gmra.mrb[36].mxu1 %vm968_vm8, %v2409_v62 }
 0x68b   :  { %3173 = vmatpush3.msra.mxu1 %v3937_v19  ;;  %3174 = vmatprep.mubr.msk.f32.mxu1 %vm968_vm8, %v2503_v48 }
 0x68e   :  { %3175 = vmatmul.mubr.msk.f32.vlgmr.msra.gmra.mrb[38].mxu1 %vm968_vm8, %v2504_v63 }
 0x755   :  { %v3161_v7 = vpop.f32.mrb[32].mxu1 }
 0x756   :  { %v2292_v5 = vpop.f32.mrb[33].mxu1  ;;  %v2310_v10 = vmul.f32 %v3161_v7, %v2306_v51 }
 0x757   :  { %v2309_v14 = vmul.f32 %v2304_v56, %v2292_v5 }
 0x759   :  { %v3166_v9 = vpop.f32.mrb[34].mxu1 }
 0x75a   :  { %v2405_v11 = vmul.f32 %v3166_v9, %v2401_v6  ;;  %v2387_v12 = vpop.f32.mrb[35].mxu1 }
 0x75b   :  { %v2404_v15 = vmul.f32 %v2399_v8, %v2387_v12 }
 0x75c   :  { %v2407_v17 = vadd.f32 %v2405_v11, %v2310_v10 }
 0x75d   :  { %v2406_v19 = vadd.f32 %v2404_v15, %v2309_v14  ;;  %v3171_v18 = vpop.f32.mrb[36].mxu1 }
 0x75e   :  { %v2500_v20 = vmul.f32 %v3171_v18, %v2496_v13  ;;  %v2482_v22 = vpop.f32.mrb[37].mxu1 }
 0x75f   :  { %v2499_v24 = vmul.f32 %v2494_v16, %v2482_v22 }
 0x760   :  { %v2502_v25 = vadd.f32 %v2500_v20, %v2407_v17 }
 0x761   :  { %v2501_v26 = vadd.f32 %v2499_v24, %v2406_v19  ;;  %v3176_v23 = vpop.f32.mrb[38].mxu1 }
 0x762   :  { %v2595_v28 = vmul.f32 %v3176_v23, %v2591_v21  ;;  %v2577_v29 = vpop.f32.mrb[39].mxu1 }
 0x763   :  { %v2594_v30 = vmul.f32 %v2589_v27, %v2577_v29 }
 0x764   :  { %v2597_v31 = vadd.f32 %v2595_v28, %v2502_v25 }
 0x765   :  { %v2596_v36 = vadd.f32 %v2594_v30, %v2501_v26 }
 0x766   :  { %v2599_v32 = vmax.f32 %v4115_v38, %v2597_v31 }
 0x767   :  { %v2598_v33 = vmax.f32 %v4117_v39, %v2596_v36 }
 0x768   :  { %2601 = vst.msk [vmem:[#allocation2 + $0x8] sm:$0xff] %vm79_vm0, %v2599_v32 }
 0x769   :  { %2600 = vst.msk [vmem:[#allocation2] sm:$0xff] %vm79_vm0, %v2598_v33 }
 0x76a   :  { %3468 = shalt.err (!%p3465_p4)
}
 0x76b   :  { %s3469_s8 = scalar_lea.hbm %s4368_s15, 256 }
 0x76c   :  { %p3470_p5 = scmp.ne.s32.totalorder %s4368_s15, %s3469_s8  ;;  %p3473_p6 = scmp.lt.u32.totalorder %s3469_s8, %s4368_s15 }
 0x76e   :  { %p3475_p7 = pnand %p3473_p6, %p3470_p5 }
 0x770   :  { %3478 = shalt.err (!%p3475_p7)
}
 0x771   :  { %s3487_s17 = smov 128   ;;  %s3488_s18 = smov 8  }
 0x772   :  { %2613 = dma.vmem_to_hbm [thread:$0]  %s2608_s10, 256, %s4368_s15, [#allocation3], %s3487_s17, %s3487_s17, %s3488_s18  }
 0x773   :  { %3479 = dma.done.wait [#allocation3], 256  }
 0x774   :  { %3480 = vsyncadd [#allocation3], 4294967040 }
 0x775   :  { %2617 = vsyncpa [#allocation3], 1 }

</bundles_post_ra>
